<compile_context>
chip_gen: v6e
topology: v6e:2x2x1
jax: 0.10.0
libtpu: 0.0.40
codegen_flags: <defaults>
</compile_context>

<pallas_src>
import jax
import jax.numpy as jnp
from jax.experimental import pallas as pl
from jax.experimental.pallas import tpu as pltpu


def _round_up(a, m):
    return -(-a // m) * m


# ----------------------------- kernel ---------------------------------------


def _cbr_kernel(xm_ref, xt_ref, xb_ref, w_ref, shift_ref, out_ref):
    """One (batch, row-tile) step of 3x3 conv (stride 1, pad 1) + folded BN + ReLU.

    xm_ref    : (1, TH, W, Cin)   f32  main rows [i*TH, i*TH + TH) of the un-padded input
    xt_ref    : (1, 1,  W, Cin)   f32  row i*TH - 1 (clamped; contribution zeroed when i == 0)
    xb_ref    : (1, 1,  W, Cin)   f32  row i*TH + TH (clamped; zeroed on the last tile)
    w_ref     : (3, 3*Cin, Cp)    bf16 per-kh, kw-packed conv weights with BN scale folded in
    shift_ref : (1, Cp)           f32  folded conv bias + BN shift
    out_ref   : (1, TH, W, Cp)    f32  (Cp = Cout rounded up to 128 lanes)
    """
    _, TH, W, Cin = xm_ref.shape
    Cp = out_ref.shape[-1]
    M = TH * W

    ti = pl.program_id(1)
    last = pl.num_programs(1) - 1

    def im2col_w(x2d):
        # x2d: (rows*W, Cin) f32, rows flattened row-major.  Returns the kw-im2col
        # (rows*W, 3*Cin) = [x[., w-1], x[., w], x[., w+1]] in bf16, with the pad=1
        # zero column substituted at the left/right image border (edge mask kills
        # the roll wrap-around, which is exactly the padded-zero semantics).
        m = x2d.shape[0]
        col = jax.lax.broadcasted_iota(jnp.int32, (m, 1), 0) % W
        xl = jnp.where(col == 0, jnp.zeros_like(x2d), pltpu.roll(x2d, 1, axis=0))
        xr = jnp.where(col == W - 1, jnp.zeros_like(x2d),
                       pltpu.roll(x2d, m - 1, axis=0))
        return jnp.concatenate([xl, x2d, xr], axis=-1).astype(jnp.bfloat16)

    # Main rows: f32 -> bf16 cast happens here (no wrapper-side cast round trip).
    pm = im2col_w(xm_ref[...].reshape(M, Cin))                       # (M, 3*Cin)

    # Halo rows; zeroed at the image border (the pad=1 top/bottom zero row).
    tfac = (ti > 0).astype(jnp.float32)
    bfac = (ti < last).astype(jnp.float32)
    pt = im2col_w(xt_ref[0, 0] * tfac)                               # (W, 3*Cin)
    pb = im2col_w(xb_ref[0, 0] * bfac)                               # (W, 3*Cin)

    # kh = 1 (centre row) covers every output row: initialise the output block
    # straight from the first matmul (no broadcast of the shift up front).
    out_ref[...] = jnp.dot(pm, w_ref[1],
                           preferred_element_type=jnp.float32
                           ).reshape(1, TH, W, Cp)

    # kh = 0 (row above) / kh = 2 (row below): interior rows come from the main
    # slab, accumulated into row sub-ranges of the VMEM-resident output block.
    if TH > 1:
        up = jnp.dot(pm[:(TH - 1) * W], w_ref[0],
                     preferred_element_type=jnp.float32)
        out_ref[:, 1:TH, :, :] += up.reshape(1, TH - 1, W, Cp)
        dn = jnp.dot(pm[W:], w_ref[2], preferred_element_type=jnp.float32)
        out_ref[:, 0:TH - 1, :, :] += dn.reshape(1, TH - 1, W, Cp)

    # Halo rows feed the first / last output row of the tile.
    out_ref[:, 0:1, :, :] += jnp.dot(
        pt, w_ref[0], preferred_element_type=jnp.float32).reshape(1, 1, W, Cp)
    out_ref[:, TH - 1:TH, :, :] += jnp.dot(
        pb, w_ref[2], preferred_element_type=jnp.float32).reshape(1, 1, W, Cp)

    # Folded bias / BN shift + ReLU epilogue (single full-lane store pattern).
    out_ref[...] = jnp.maximum(out_ref[...] + shift_ref[...],
                               0.0).astype(out_ref.dtype)


# ----------------------------- tiling / wrapper ------------------------------


def _vmem_budget_and_limit():
    """Generation-aware (v5e/v6e: 128 MiB, v7x: 64 MiB) picker budget + scoped limit."""
    cap = 64 * 1024 * 1024
    try:
        info = pltpu.get_tpu_info()
        cap = int(getattr(info, "vmem_capacity_bytes", cap) or cap)
    except Exception:
        pass
    return int(cap * 0.45), int(cap * 0.72)


def _pick_row_tile(H, W, cin, cout_pad, budget_bytes, min_tiles=1):
    """Largest row tile dividing H whose lane/sublane-padded working set fits."""
    rW = _round_up(W, 8)              # f32 sublane padding of the width axis
    rcin = _round_up(cin, 128)        # lane padding of the input channels
    rk = _round_up(3 * cin, 128)      # lane padding of the packed contraction dim

    def footprint(th):
        m = th * rW
        blocks = (2 * th * rW * rcin * 4          # main input block, double-buffered
                  + 2 * 2 * rW * rcin * 4         # two 1-row halo blocks
                  + 2 * th * rW * cout_pad * 4)   # output block, double-buffered
        weights = 2 * (3 * _round_up(3 * cin, 16) * cout_pad * 2
                       + 8 * cout_pad * 4)
        temps = m * (4 * rcin * 4 + rk * 4 + rk * 2 + 3 * cout_pad * 4)
        return blocks + weights + temps

    divisors = [t for t in range(1, H + 1) if H % t == 0]
    cands = [t for t in divisors if H // t >= min_tiles] or divisors
    fitting = [t for t in cands if footprint(t) <= budget_bytes]
    return max(fitting) if fitting else min(cands)


def conv2d_batchnorm_relu_nhwc(x, w_oihw, bias, gamma, beta, mean, var,
                               eps=1e-5, row_tile=None):
    """Fused Conv2d(3x3, s=1, p=1) + BatchNorm2d(eval) + ReLU, NHWC f32 in/out."""
    N, H, W, Cin = x.shape
    Cout = w_oihw.shape[0]
    assert w_oihw.shape == (Cout, Cin, 3, 3), "kernel specialized to 3x3 conv"
    # TODO(synk): general k_size / stride / dilation and the is_batchnorm=False path.

    # Fold BN (inference) + conv bias:  y = conv(x, w*scale) + shift.
    scale = gamma / jnp.sqrt(var + eps)
    w_hwio = jnp.transpose(w_oihw, (2, 3, 1, 0)) * scale[None, None, None, :]
    cp = _round_up(Cout, 128)                                  # lane-dense output
    # Pack kw into the contraction dim: (3, 3*Cin, Cout_pad), channel order
    # [kw=0 | kw=1 | kw=2] to match the [left | centre | right] patch blocks.
    w_pack = jnp.pad(w_hwio.reshape(3, 3 * Cin, Cout),
                     ((0, 0), (0, 0), (0, cp - Cout))).astype(jnp.bfloat16)
    shift = jnp.pad((bias - mean) * scale + beta, (0, cp - Cout))
    shift = shift.reshape(1, cp).astype(jnp.float32)

    budget, vmem_limit = _vmem_budget_and_limit()
    min_tiles = 2 if N == 1 else 1                      # keep both TCs busy (megacore)
    TH = row_tile if row_tile is not None else _pick_row_tile(
        H, W, Cin, cp, budget, min_tiles)
    assert H % TH == 0, "row tile must divide the image height"
    nt = H // TH
    grid = (N, nt)

    in_specs = [
        # Main rows of this tile (un-padded input, f32; cast to bf16 in-kernel).
        pl.BlockSpec((1, TH, W, Cin), lambda n, i: (n, i, 0, 0)),
        # 1-row top halo (row i*TH - 1, clamped; kernel zeroes it on the first tile).
        pl.BlockSpec((1, 1, W, Cin),
                     lambda n, i: (n, jnp.maximum(i * TH - 1, 0), 0, 0)),
        # 1-row bottom halo (row i*TH + TH, clamped; zeroed on the last tile).
        pl.BlockSpec((1, 1, W, Cin),
                     lambda n, i: (n, jnp.minimum((i + 1) * TH, H - 1), 0, 0)),
        # Folded, packed weights / shift: same small block every step (stay resident).
        pl.BlockSpec((3, 3 * Cin, cp), lambda n, i: (0, 0, 0)),
        pl.BlockSpec((1, cp), lambda n, i: (0, 0)),
    ]
    out_specs = pl.BlockSpec((1, TH, W, cp), lambda n, i: (n, i, 0, 0))

    flops = 2 * N * H * W * cp * 9 * Cin
    bytes_accessed = (N * H * W * Cin * 4 * (TH + 2) // TH    # f32 input (+halo reread)
                      + N * H * W * cp * 4                    # f32 output
                      + w_pack.size * 2 + shift.size * 4)
    cost = pl.CostEstimate(flops=int(flops), transcendentals=0,
                           bytes_accessed=int(bytes_accessed))

    out = pl.pallas_call(
        _cbr_kernel,
        out_shape=jax.ShapeDtypeStruct((N, H, W, cp), jnp.float32),
        grid=grid,
        in_specs=in_specs,
        out_specs=out_specs,
        compiler_params=pltpu.CompilerParams(
            dimension_semantics=("parallel", "parallel"),
            vmem_limit_bytes=int(vmem_limit)),
        cost_estimate=cost,
    )(x, x, x, w_pack, shift)

    # TODO(synk): fused consumers could take the lane-padded (.., cp) tensor (or a
    # bf16 variant) directly and skip this slice.
    return out[..., :Cout] if cp != Cout else out


def conv2d_batchnorm_relu(x_nchw, w_oihw, bias, gamma, beta, mean, var,
                          eps=1e-5, row_tile=None):
    """PyTorch-layout (NCHW f32) compatibility wrapper around the NHWC kernel."""
    x = jnp.transpose(x_nchw, (0, 2, 3, 1))
    y = conv2d_batchnorm_relu_nhwc(x, w_oihw, bias, gamma, beta, mean, var,
                                   eps=eps, row_tile=row_tile)
    return jnp.transpose(y, (0, 3, 1, 2))


# ----------------------------- references -----------------------------------


def _fold_reference(x, w_oihw, bias, gamma, beta, mean, var, eps=1e-5):
    """Same-precision reference: identical bf16 operands, f32 accumulation."""
    scale = gamma / jnp.sqrt(var + eps)
    w_hwio = jnp.transpose(w_oihw, (2, 3, 1, 0))
    w_f = (w_hwio * scale[None, None, None, :]).astype(jnp.bfloat16)
    shift = (bias - mean) * scale + beta
    xh = jnp.transpose(x, (0, 2, 3, 1)).astype(jnp.bfloat16)
    c = jax.lax.conv_general_dilated(
        xh, w_f, (1, 1), [(1, 1), (1, 1)],
        dimension_numbers=("NHWC", "HWIO", "NHWC"),
        preferred_element_type=jnp.float32)
    y = jnp.maximum(c + shift[None, None, None, :], 0.0)
    return jnp.transpose(y, (0, 3, 1, 2))


def _module_reference(x, w_oihw, bias, gamma, beta, mean, var, eps=1e-5):
    """Full-f32, PyTorch-order reference: Conv2d(+bias) -> BatchNorm2d(eval) -> ReLU."""
    xh = jnp.transpose(x, (0, 2, 3, 1))
    w_hwio = jnp.transpose(w_oihw, (2, 3, 1, 0))
    c = jax.lax.conv_general_dilated(
        xh, w_hwio, (1, 1), [(1, 1), (1, 1)],
        dimension_numbers=("NHWC", "HWIO", "NHWC")) + bias[None, None, None, :]
    bn = (c - mean) / jnp.sqrt(var + eps) * gamma + beta
    return jnp.transpose(jnp.maximum(bn, 0.0), (0, 3, 1, 2))


if __name__ == "__main__":
    key = jax.random.PRNGKey(0)
    ks = jax.random.split(key, 6)

    # conv2DBatchNormRelu(in_channels=4, n_filters=4, k_size=3, stride=1, padding=1)
    N, Cin, Cout, H, W = 2, 4, 4, 16, 16
    x = jax.random.normal(ks[0], (N, Cin, H, W), jnp.float32)
    w = jax.random.normal(ks[1], (Cout, Cin, 3, 3), jnp.float32) * 0.2     # OIHW
    b = jax.random.normal(ks[2], (Cout,), jnp.float32) * 0.1
    gamma = 1.0 + 0.1 * jnp.arange(Cout, dtype=jnp.float32)
    beta = 0.05 * jnp.arange(Cout, dtype=jnp.float32)
    mean = jax.random.normal(ks[3], (Cout,), jnp.float32) * 0.1
    var = 1.0 + jax.random.uniform(ks[4], (Cout,), jnp.float32)

    out = jax.jit(conv2d_batchnorm_relu)(x, w, b, gamma, beta, mean, var)
    out = jax.block_until_ready(out)
    assert out.shape == (N, Cout, H, W)

    # Tight check against a reference that uses the same bf16 operands / f32 accum.
    ref_same = _fold_reference(x, w, b, gamma, beta, mean, var)
    assert jnp.allclose(out, ref_same, atol=1e-3, rtol=1e-3), (
        f"max abs err vs bf16 reference: {jnp.max(jnp.abs(out - ref_same))}")

    # Loose check against the exact PyTorch-order f32 math (bf16 rounding slack).
    ref_f32 = _module_reference(x, w, b, gamma, beta, mean, var)
    assert jnp.allclose(out, ref_f32, atol=1e-1, rtol=1e-1), (
        f"max abs err vs f32 module reference: {jnp.max(jnp.abs(out - ref_f32))}")

    # Multi-tile run (row_tile=4 -> 4 row tiles) to exercise the halo blocks and
    # the in-kernel top/bottom border masking.
    out_mt = jax.jit(
        lambda *a: conv2d_batchnorm_relu(*a, row_tile=4)
    )(x, w, b, gamma, beta, mean, var)
    out_mt = jax.block_until_ready(out_mt)
    assert jnp.allclose(out_mt, ref_same, atol=1e-3, rtol=1e-3), (
        f"multi-tile max abs err: {jnp.max(jnp.abs(out_mt - ref_same))}")

    print("KERNEL_OK")
</pallas_src>

<mosaic_0001>
module attributes {stable_mosaic.version = 11 : i64} {
  func.func @_cbr_kernel(%arg0: i32, %arg1: i32, %arg2: memref<1x16x16x4xf32, #tpu.memory_space<vmem>>, %arg3: memref<1x1x16x4xf32, #tpu.memory_space<vmem>>, %arg4: memref<1x1x16x4xf32, #tpu.memory_space<vmem>>, %arg5: memref<3x12x128xbf16, #tpu.memory_space<vmem>>, %arg6: memref<1x128xf32, #tpu.memory_space<vmem>>, %arg7: memref<1x16x16x128xf32, #tpu.memory_space<vmem>>) attributes {dimension_semantics = [#tpu.dimension_semantics<parallel>, #tpu.dimension_semantics<parallel>], iteration_bounds = array<i64: 2, 1>, scalar_prefetch = 0 : i64, scratch_operands = 0 : i64, tpu.core_type = #tpu.core_type<tc>, window_params = [{transform_indices = @transform_0, window_bounds = array<i64: 1, 16, 16, 4>}, {transform_indices = @transform_1, window_bounds = array<i64: 1, 1, 16, 4>}, {transform_indices = @transform_2, window_bounds = array<i64: 1, 1, 16, 4>}, {pipeline_mode = #tpu.pipeline_mode<synchronous>, transform_indices = @transform_3, window_bounds = array<i64: 3, 12, 128>}, {pipeline_mode = #tpu.pipeline_mode<synchronous>, transform_indices = @transform_4, window_bounds = array<i64: 1, 128>}, {transform_indices = @transform_5, window_bounds = array<i64: 1, 16, 16, 128>}]} {
    %c0 = arith.constant 0 : index
    %c0_0 = arith.constant 0 : index
    %c0_1 = arith.constant 0 : index
    %c0_2 = arith.constant 0 : index
    %0 = vector.load %arg2[%c0, %c0_0, %c0_1, %c0_2] : memref<1x16x16x4xf32, #tpu.memory_space<vmem>>, vector<1x16x16x4xf32>
    %1 = vector.shape_cast %0 : vector<1x16x16x4xf32> to vector<256x4xf32>
    %2 = tpu.iota {dimensions = array<i32: 0>} : vector<256x1xi32>
    %c16_i32 = arith.constant 16 : i32
    %c0_i32 = arith.constant 0 : i32
    %3 = arith.cmpi eq, %c16_i32, %c0_i32 : i32
    %c1_i32 = arith.constant 1 : i32
    %4 = arith.select %3, %c1_i32, %c16_i32 : i32
    %5 = vector.broadcast %4 : i32 to vector<256x1xi32>
    %6 = arith.remsi %2, %5 : vector<256x1xi32>
    %c0_i32_3 = arith.constant 0 : i32
    %7 = vector.broadcast %c0_i32_3 : i32 to vector<256x1xi32>
    %8 = arith.cmpi ne, %6, %7 : vector<256x1xi32>
    %c0_i32_4 = arith.constant 0 : i32
    %9 = vector.broadcast %c0_i32_4 : i32 to vector<256x1xi32>
    %10 = arith.cmpi slt, %6, %9 : vector<256x1xi32>
    %c0_i32_5 = arith.constant 0 : i32
    %11 = arith.cmpi slt, %4, %c0_i32_5 : i32
    %12 = vector.broadcast %11 : i1 to vector<256x1xi1>
    %13 = vector.broadcast %12 : vector<256x1xi1> to vector<256x1xi1>
    %14 = arith.xori %10, %13 : vector<256x1xi1>
    %15 = arith.andi %14, %8 : vector<256x1xi1>
    %16 = vector.broadcast %4 : i32 to vector<256x1xi32>
    %17 = arith.addi %6, %16 : vector<256x1xi32>
    %18 = arith.select %15, %17, %6 : vector<256x1xi1>, vector<256x1xi32>
    %c0_i32_6 = arith.constant 0 : i32
    %19 = vector.broadcast %c0_i32_6 : i32 to vector<256x1xi32>
    %20 = arith.cmpi eq, %18, %19 : vector<256x1xi32>
    %cst = arith.constant 0.000000e+00 : f32
    %21 = vector.broadcast %cst : f32 to vector<256x4xf32>
    %c1_i32_7 = arith.constant 1 : i32
    %22 = tpu.dynamic_rotate %1 by %c1_i32_7 dim 0 : vector<256x4xf32>, i32 -> vector<256x4xf32>
    %23 = vector.shape_cast %20 : vector<256x1xi1> to vector<256x1xi1>
    %24 = vector.broadcast %23 : vector<256x1xi1> to vector<256x4xi1>
    %25 = arith.select %24, %21, %22 : vector<256x4xi1>, vector<256x4xf32>
    %c15_i32 = arith.constant 15 : i32
    %26 = vector.broadcast %c15_i32 : i32 to vector<256x1xi32>
    %27 = arith.cmpi eq, %18, %26 : vector<256x1xi32>
    %cst_8 = arith.constant 0.000000e+00 : f32
    %28 = vector.broadcast %cst_8 : f32 to vector<256x4xf32>
    %c255_i32 = arith.constant 255 : i32
    %29 = tpu.dynamic_rotate %1 by %c255_i32 dim 0 : vector<256x4xf32>, i32 -> vector<256x4xf32>
    %30 = vector.shape_cast %27 : vector<256x1xi1> to vector<256x1xi1>
    %31 = vector.broadcast %30 : vector<256x1xi1> to vector<256x4xi1>
    %32 = arith.select %31, %28, %29 : vector<256x4xi1>, vector<256x4xf32>
    %33 = tpu.concatenate %25, %1, %32 in 1 : vector<256x4xf32>, vector<256x4xf32>, vector<256x4xf32> -> vector<256x12xf32>
    %34 = arith.truncf %33 : vector<256x12xf32> to vector<256x12xbf16>
    %c0_i32_9 = arith.constant 0 : i32
    %35 = arith.cmpi sgt, %arg1, %c0_i32_9 : i32
    %36 = arith.extui %35 : i1 to i32
    %37 = arith.sitofp %36 : i32 to f32
    %c0_i32_10 = arith.constant 0 : i32
    %38 = arith.cmpi slt, %arg1, %c0_i32_10 : i32
    %39 = arith.extui %38 : i1 to i32
    %40 = arith.sitofp %39 : i32 to f32
    %c0_11 = arith.constant 0 : index
    %c0_12 = arith.constant 0 : index
    %c0_13 = arith.constant 0 : index
    %c0_14 = arith.constant 0 : index
    %41 = vector.load %arg3[%c0_11, %c0_12, %c0_13, %c0_14] : memref<1x1x16x4xf32, #tpu.memory_space<vmem>>, vector<1x1x16x4xf32>
    %42 = vector.shape_cast %41 : vector<1x1x16x4xf32> to vector<16x4xf32>
    %43 = vector.broadcast %37 : f32 to vector<16x4xf32>
    %44 = arith.mulf %42, %43 : vector<16x4xf32>
    %45 = tpu.iota {dimensions = array<i32: 0>} : vector<16x1xi32>
    %c16_i32_15 = arith.constant 16 : i32
    %c0_i32_16 = arith.constant 0 : i32
    %46 = arith.cmpi eq, %c16_i32_15, %c0_i32_16 : i32
    %c1_i32_17 = arith.constant 1 : i32
    %47 = arith.select %46, %c1_i32_17, %c16_i32_15 : i32
    %48 = vector.broadcast %47 : i32 to vector<16x1xi32>
    %49 = arith.remsi %45, %48 : vector<16x1xi32>
    %c0_i32_18 = arith.constant 0 : i32
    %50 = vector.broadcast %c0_i32_18 : i32 to vector<16x1xi32>
    %51 = arith.cmpi ne, %49, %50 : vector<16x1xi32>
    %c0_i32_19 = arith.constant 0 : i32
    %52 = vector.broadcast %c0_i32_19 : i32 to vector<16x1xi32>
    %53 = arith.cmpi slt, %49, %52 : vector<16x1xi32>
    %c0_i32_20 = arith.constant 0 : i32
    %54 = arith.cmpi slt, %47, %c0_i32_20 : i32
    %55 = vector.broadcast %54 : i1 to vector<16x1xi1>
    %56 = vector.broadcast %55 : vector<16x1xi1> to vector<16x1xi1>
    %57 = arith.xori %53, %56 : vector<16x1xi1>
    %58 = arith.andi %57, %51 : vector<16x1xi1>
    %59 = vector.broadcast %47 : i32 to vector<16x1xi32>
    %60 = arith.addi %49, %59 : vector<16x1xi32>
    %61 = arith.select %58, %60, %49 : vector<16x1xi1>, vector<16x1xi32>
    %c0_i32_21 = arith.constant 0 : i32
    %62 = vector.broadcast %c0_i32_21 : i32 to vector<16x1xi32>
    %63 = arith.cmpi eq, %61, %62 : vector<16x1xi32>
    %cst_22 = arith.constant 0.000000e+00 : f32
    %64 = vector.broadcast %cst_22 : f32 to vector<16x4xf32>
    %c1_i32_23 = arith.constant 1 : i32
    %65 = tpu.dynamic_rotate %44 by %c1_i32_23 dim 0 : vector<16x4xf32>, i32 -> vector<16x4xf32>
    %66 = vector.shape_cast %63 : vector<16x1xi1> to vector<16x1xi1>
    %67 = vector.broadcast %66 : vector<16x1xi1> to vector<16x4xi1>
    %68 = arith.select %67, %64, %65 : vector<16x4xi1>, vector<16x4xf32>
    %c15_i32_24 = arith.constant 15 : i32
    %69 = vector.broadcast %c15_i32_24 : i32 to vector<16x1xi32>
    %70 = arith.cmpi eq, %61, %69 : vector<16x1xi32>
    %cst_25 = arith.constant 0.000000e+00 : f32
    %71 = vector.broadcast %cst_25 : f32 to vector<16x4xf32>
    %c15_i32_26 = arith.constant 15 : i32
    %72 = tpu.dynamic_rotate %44 by %c15_i32_26 dim 0 : vector<16x4xf32>, i32 -> vector<16x4xf32>
    %73 = vector.shape_cast %70 : vector<16x1xi1> to vector<16x1xi1>
    %74 = vector.broadcast %73 : vector<16x1xi1> to vector<16x4xi1>
    %75 = arith.select %74, %71, %72 : vector<16x4xi1>, vector<16x4xf32>
    %76 = tpu.concatenate %68, %44, %75 in 1 : vector<16x4xf32>, vector<16x4xf32>, vector<16x4xf32> -> vector<16x12xf32>
    %77 = arith.truncf %76 : vector<16x12xf32> to vector<16x12xbf16>
    %c0_27 = arith.constant 0 : index
    %c0_28 = arith.constant 0 : index
    %c0_29 = arith.constant 0 : index
    %c0_30 = arith.constant 0 : index
    %78 = vector.load %arg4[%c0_27, %c0_28, %c0_29, %c0_30] : memref<1x1x16x4xf32, #tpu.memory_space<vmem>>, vector<1x1x16x4xf32>
    %79 = vector.shape_cast %78 : vector<1x1x16x4xf32> to vector<16x4xf32>
    %80 = vector.broadcast %40 : f32 to vector<16x4xf32>
    %81 = arith.mulf %79, %80 : vector<16x4xf32>
    %82 = tpu.iota {dimensions = array<i32: 0>} : vector<16x1xi32>
    %c16_i32_31 = arith.constant 16 : i32
    %c0_i32_32 = arith.constant 0 : i32
    %83 = arith.cmpi eq, %c16_i32_31, %c0_i32_32 : i32
    %c1_i32_33 = arith.constant 1 : i32
    %84 = arith.select %83, %c1_i32_33, %c16_i32_31 : i32
    %85 = vector.broadcast %84 : i32 to vector<16x1xi32>
    %86 = arith.remsi %82, %85 : vector<16x1xi32>
    %c0_i32_34 = arith.constant 0 : i32
    %87 = vector.broadcast %c0_i32_34 : i32 to vector<16x1xi32>
    %88 = arith.cmpi ne, %86, %87 : vector<16x1xi32>
    %c0_i32_35 = arith.constant 0 : i32
    %89 = vector.broadcast %c0_i32_35 : i32 to vector<16x1xi32>
    %90 = arith.cmpi slt, %86, %89 : vector<16x1xi32>
    %c0_i32_36 = arith.constant 0 : i32
    %91 = arith.cmpi slt, %84, %c0_i32_36 : i32
    %92 = vector.broadcast %91 : i1 to vector<16x1xi1>
    %93 = vector.broadcast %92 : vector<16x1xi1> to vector<16x1xi1>
    %94 = arith.xori %90, %93 : vector<16x1xi1>
    %95 = arith.andi %94, %88 : vector<16x1xi1>
    %96 = vector.broadcast %84 : i32 to vector<16x1xi32>
    %97 = arith.addi %86, %96 : vector<16x1xi32>
    %98 = arith.select %95, %97, %86 : vector<16x1xi1>, vector<16x1xi32>
    %c0_i32_37 = arith.constant 0 : i32
    %99 = vector.broadcast %c0_i32_37 : i32 to vector<16x1xi32>
    %100 = arith.cmpi eq, %98, %99 : vector<16x1xi32>
    %cst_38 = arith.constant 0.000000e+00 : f32
    %101 = vector.broadcast %cst_38 : f32 to vector<16x4xf32>
    %c1_i32_39 = arith.constant 1 : i32
    %102 = tpu.dynamic_rotate %81 by %c1_i32_39 dim 0 : vector<16x4xf32>, i32 -> vector<16x4xf32>
    %103 = vector.shape_cast %100 : vector<16x1xi1> to vector<16x1xi1>
    %104 = vector.broadcast %103 : vector<16x1xi1> to vector<16x4xi1>
    %105 = arith.select %104, %101, %102 : vector<16x4xi1>, vector<16x4xf32>
    %c15_i32_40 = arith.constant 15 : i32
    %106 = vector.broadcast %c15_i32_40 : i32 to vector<16x1xi32>
    %107 = arith.cmpi eq, %98, %106 : vector<16x1xi32>
    %cst_41 = arith.constant 0.000000e+00 : f32
    %108 = vector.broadcast %cst_41 : f32 to vector<16x4xf32>
    %c15_i32_42 = arith.constant 15 : i32
    %109 = tpu.dynamic_rotate %81 by %c15_i32_42 dim 0 : vector<16x4xf32>, i32 -> vector<16x4xf32>
    %110 = vector.shape_cast %107 : vector<16x1xi1> to vector<16x1xi1>
    %111 = vector.broadcast %110 : vector<16x1xi1> to vector<16x4xi1>
    %112 = arith.select %111, %108, %109 : vector<16x4xi1>, vector<16x4xf32>
    %113 = tpu.concatenate %105, %81, %112 in 1 : vector<16x4xf32>, vector<16x4xf32>, vector<16x4xf32> -> vector<16x12xf32>
    %114 = arith.truncf %113 : vector<16x12xf32> to vector<16x12xbf16>
    %c1 = arith.constant 1 : index
    %c0_43 = arith.constant 0 : index
    %c0_44 = arith.constant 0 : index
    %115 = vector.load %arg5[%c1, %c0_43, %c0_44] : memref<3x12x128xbf16, #tpu.memory_space<vmem>>, vector<1x12x128xbf16>
    %116 = vector.shape_cast %115 : vector<1x12x128xbf16> to vector<12x128xbf16>
    %cst_45 = arith.constant dense<0.000000e+00> : vector<256x128xf32>
    %117 = tpu.matmul %34, %116, %cst_45 {dimension_numbers = #tpu.dot_dimension_numbers<[1], [0], [0], [1], [0, 0, 1, 1], [], []>} : vector<256x12xbf16>, vector<12x128xbf16>, vector<256x128xf32> -> vector<256x128xf32>
    %118 = vector.shape_cast %117 : vector<256x128xf32> to vector<1x16x16x128xf32>
    %c0_46 = arith.constant 0 : index
    %c0_47 = arith.constant 0 : index
    %c0_48 = arith.constant 0 : index
    %c0_49 = arith.constant 0 : index
    %119 = vector.load %arg7[%c0_46, %c0_47, %c0_48, %c0_49] : memref<1x16x16x128xf32, #tpu.memory_space<vmem>>, vector<1x16x16x128xf32>
    tpu.vector_store %arg7[%c0_46, %c0_47, %c0_48, %c0_49], %118 {strides = array<i32>} : memref<1x16x16x128xf32, #tpu.memory_space<vmem>>, vector<1x16x16x128xf32>,
    %120 = vector.extract_strided_slice %34 {offsets = [0, 0], sizes = [240, 12], strides = [1, 1]} : vector<256x12xbf16> to vector<240x12xbf16>
    %c0_50 = arith.constant 0 : index
    %c0_51 = arith.constant 0 : index
    %c0_52 = arith.constant 0 : index
    %121 = vector.load %arg5[%c0_50, %c0_51, %c0_52] : memref<3x12x128xbf16, #tpu.memory_space<vmem>>, vector<1x12x128xbf16>
    %122 = vector.shape_cast %121 : vector<1x12x128xbf16> to vector<12x128xbf16>
    %cst_53 = arith.constant dense<0.000000e+00> : vector<240x128xf32>
    %123 = tpu.matmul %120, %122, %cst_53 {dimension_numbers = #tpu.dot_dimension_numbers<[1], [0], [0], [1], [0, 0, 1, 1], [], []>} : vector<240x12xbf16>, vector<12x128xbf16>, vector<240x128xf32> -> vector<240x128xf32>
    %c0_54 = arith.constant 0 : index
    %c1_55 = arith.constant 1 : index
    %c0_56 = arith.constant 0 : index
    %c0_57 = arith.constant 0 : index
    %124 = vector.load %arg7[%c0_54, %c1_55, %c0_56, %c0_57] : memref<1x16x16x128xf32, #tpu.memory_space<vmem>>, vector<1x15x16x128xf32>
    %125 = vector.shape_cast %123 : vector<240x128xf32> to vector<1x15x16x128xf32>
    %126 = arith.addf %124, %125 : vector<1x15x16x128xf32>
    %c0_58 = arith.constant 0 : index
    %c1_59 = arith.constant 1 : index
    %c0_60 = arith.constant 0 : index
    %c0_61 = arith.constant 0 : index
    %127 = vector.load %arg7[%c0_58, %c1_59, %c0_60, %c0_61] : memref<1x16x16x128xf32, #tpu.memory_space<vmem>>, vector<1x15x16x128xf32>
    tpu.vector_store %arg7[%c0_58, %c1_59, %c0_60, %c0_61], %126 {strides = array<i32>} : memref<1x16x16x128xf32, #tpu.memory_space<vmem>>, vector<1x15x16x128xf32>,
    %128 = vector.extract_strided_slice %34 {offsets = [16, 0], sizes = [240, 12], strides = [1, 1]} : vector<256x12xbf16> to vector<240x12xbf16>
    %c2 = arith.constant 2 : index
    %c0_62 = arith.constant 0 : index
    %c0_63 = arith.constant 0 : index
    %129 = vector.load %arg5[%c2, %c0_62, %c0_63] : memref<3x12x128xbf16, #tpu.memory_space<vmem>>, vector<1x12x128xbf16>
    %130 = vector.shape_cast %129 : vector<1x12x128xbf16> to vector<12x128xbf16>
    %cst_64 = arith.constant dense<0.000000e+00> : vector<240x128xf32>
    %131 = tpu.matmul %128, %130, %cst_64 {dimension_numbers = #tpu.dot_dimension_numbers<[1], [0], [0], [1], [0, 0, 1, 1], [], []>} : vector<240x12xbf16>, vector<12x128xbf16>, vector<240x128xf32> -> vector<240x128xf32>
    %c0_65 = arith.constant 0 : index
    %c0_66 = arith.constant 0 : index
    %c0_67 = arith.constant 0 : index
    %c0_68 = arith.constant 0 : index
    %132 = vector.load %arg7[%c0_65, %c0_66, %c0_67, %c0_68] : memref<1x16x16x128xf32, #tpu.memory_space<vmem>>, vector<1x15x16x128xf32>
    %133 = vector.shape_cast %131 : vector<240x128xf32> to vector<1x15x16x128xf32>
    %134 = arith.addf %132, %133 : vector<1x15x16x128xf32>
    %c0_69 = arith.constant 0 : index
    %c0_70 = arith.constant 0 : index
    %c0_71 = arith.constant 0 : index
    %c0_72 = arith.constant 0 : index
    %135 = vector.load %arg7[%c0_69, %c0_70, %c0_71, %c0_72] : memref<1x16x16x128xf32, #tpu.memory_space<vmem>>, vector<1x15x16x128xf32>
    tpu.vector_store %arg7[%c0_69, %c0_70, %c0_71, %c0_72], %134 {strides = array<i32>} : memref<1x16x16x128xf32, #tpu.memory_space<vmem>>, vector<1x15x16x128xf32>,
    %c0_73 = arith.constant 0 : index
    %c0_74 = arith.constant 0 : index
    %c0_75 = arith.constant 0 : index
    %c0_76 = arith.constant 0 : index
    %136 = vector.load %arg7[%c0_73, %c0_74, %c0_75, %c0_76] : memref<1x16x16x128xf32, #tpu.memory_space<vmem>>, vector<1x1x16x128xf32>
    %c0_77 = arith.constant 0 : index
    %c0_78 = arith.constant 0 : index
    %c0_79 = arith.constant 0 : index
    %137 = vector.load %arg5[%c0_77, %c0_78, %c0_79] : memref<3x12x128xbf16, #tpu.memory_space<vmem>>, vector<1x12x128xbf16>
    %138 = vector.shape_cast %137 : vector<1x12x128xbf16> to vector<12x128xbf16>
    %cst_80 = arith.constant dense<0.000000e+00> : vector<16x128xf32>
    %139 = tpu.matmul %77, %138, %cst_80 {dimension_numbers = #tpu.dot_dimension_numbers<[1], [0], [0], [1], [0, 0, 1, 1], [], []>} : vector<16x12xbf16>, vector<12x128xbf16>, vector<16x128xf32> -> vector<16x128xf32>
    %140 = vector.shape_cast %139 : vector<16x128xf32> to vector<1x1x16x128xf32>
    %141 = arith.addf %136, %140 : vector<1x1x16x128xf32>
    %c0_81 = arith.constant 0 : index
    %c0_82 = arith.constant 0 : index
    %c0_83 = arith.constant 0 : index
    %c0_84 = arith.constant 0 : index
    %142 = vector.load %arg7[%c0_81, %c0_82, %c0_83, %c0_84] : memref<1x16x16x128xf32, #tpu.memory_space<vmem>>, vector<1x1x16x128xf32>
    tpu.vector_store %arg7[%c0_81, %c0_82, %c0_83, %c0_84], %141 {strides = array<i32>} : memref<1x16x16x128xf32, #tpu.memory_space<vmem>>, vector<1x1x16x128xf32>,
    %c0_85 = arith.constant 0 : index
    %c15 = arith.constant 15 : index
    %c0_86 = arith.constant 0 : index
    %c0_87 = arith.constant 0 : index
    %143 = vector.load %arg7[%c0_85, %c15, %c0_86, %c0_87] : memref<1x16x16x128xf32, #tpu.memory_space<vmem>>, vector<1x1x16x128xf32>
    %c2_88 = arith.constant 2 : index
    %c0_89 = arith.constant 0 : index
    %c0_90 = arith.constant 0 : index
    %144 = vector.load %arg5[%c2_88, %c0_89, %c0_90] : memref<3x12x128xbf16, #tpu.memory_space<vmem>>, vector<1x12x128xbf16>
    %145 = vector.shape_cast %144 : vector<1x12x128xbf16> to vector<12x128xbf16>
    %cst_91 = arith.constant dense<0.000000e+00> : vector<16x128xf32>
    %146 = tpu.matmul %114, %145, %cst_91 {dimension_numbers = #tpu.dot_dimension_numbers<[1], [0], [0], [1], [0, 0, 1, 1], [], []>} : vector<16x12xbf16>, vector<12x128xbf16>, vector<16x128xf32> -> vector<16x128xf32>
    %147 = vector.shape_cast %146 : vector<16x128xf32> to vector<1x1x16x128xf32>
    %148 = arith.addf %143, %147 : vector<1x1x16x128xf32>
    %c0_92 = arith.constant 0 : index
    %c15_93 = arith.constant 15 : index
    %c0_94 = arith.constant 0 : index
    %c0_95 = arith.constant 0 : index
    %149 = vector.load %arg7[%c0_92, %c15_93, %c0_94, %c0_95] : memref<1x16x16x128xf32, #tpu.memory_space<vmem>>, vector<1x1x16x128xf32>
    tpu.vector_store %arg7[%c0_92, %c15_93, %c0_94, %c0_95], %148 {strides = array<i32>} : memref<1x16x16x128xf32, #tpu.memory_space<vmem>>, vector<1x1x16x128xf32>,
    %c0_96 = arith.constant 0 : index
    %c0_97 = arith.constant 0 : index
    %c0_98 = arith.constant 0 : index
    %c0_99 = arith.constant 0 : index
    %150 = vector.load %arg7[%c0_96, %c0_97, %c0_98, %c0_99] : memref<1x16x16x128xf32, #tpu.memory_space<vmem>>, vector<1x16x16x128xf32>
    %c0_100 = arith.constant 0 : index
    %c0_101 = arith.constant 0 : index
    %151 = vector.load %arg6[%c0_100, %c0_101] : memref<1x128xf32, #tpu.memory_space<vmem>>, vector<1x128xf32>
    %152 = vector.shape_cast %151 : vector<1x128xf32> to vector<1x1x1x128xf32>
    %153 = vector.broadcast %152 : vector<1x1x1x128xf32> to vector<1x16x16x128xf32>
    %154 = arith.addf %150, %153 : vector<1x16x16x128xf32>
    %cst_102 = arith.constant 0.000000e+00 : f32
    %155 = vector.broadcast %cst_102 : f32 to vector<1x16x16x128xf32>
    %156 = arith.maximumf %154, %155 : vector<1x16x16x128xf32>
    %c0_103 = arith.constant 0 : index
    %c0_104 = arith.constant 0 : index
    %c0_105 = arith.constant 0 : index
    %c0_106 = arith.constant 0 : index
    %157 = vector.load %arg7[%c0_103, %c0_104, %c0_105, %c0_106] : memref<1x16x16x128xf32, #tpu.memory_space<vmem>>, vector<1x16x16x128xf32>
    tpu.vector_store %arg7[%c0_103, %c0_104, %c0_105, %c0_106], %156 {strides = array<i32>} : memref<1x16x16x128xf32, #tpu.memory_space<vmem>>, vector<1x16x16x128xf32>,
    return
  }
  func.func @transform_0(%arg0: i32, %arg1: i32) -> (i32, i32, i32, i32) {
    %c0_i32 = arith.constant 0 : i32
    %c0_i32_0 = arith.constant 0 : i32
    %c0_i32_1 = arith.constant 0 : i32
    return %arg0, %arg1, %c0_i32, %c0_i32_0 : i32, i32, i32, i32
  }
  func.func @transform_1(%arg0: i32, %arg1: i32) -> (i32, i32, i32, i32) {
    %c16_i32 = arith.constant 16 : i32
    %0 = arith.muli %arg1, %c16_i32 : i32
    %c1_i32 = arith.constant 1 : i32
    %1 = arith.subi %0, %c1_i32 : i32
    %c0_i32 = arith.constant 0 : i32
    %2 = arith.maxsi %1, %c0_i32 : i32
    %c0_i32_0 = arith.constant 0 : i32
    %c0_i32_1 = arith.constant 0 : i32
    %c0_i32_2 = arith.constant 0 : i32
    return %arg0, %2, %c0_i32_0, %c0_i32_1 : i32, i32, i32, i32
  }
  func.func @transform_2(%arg0: i32, %arg1: i32) -> (i32, i32, i32, i32) {
    %c1_i32 = arith.constant 1 : i32
    %0 = arith.addi %arg1, %c1_i32 : i32
    %c16_i32 = arith.constant 16 : i32
    %1 = arith.muli %0, %c16_i32 : i32
    %c15_i32 = arith.constant 15 : i32
    %2 = arith.minsi %1, %c15_i32 : i32
    %c0_i32 = arith.constant 0 : i32
    %c0_i32_0 = arith.constant 0 : i32
    %c0_i32_1 = arith.constant 0 : i32
    return %arg0, %2, %c0_i32, %c0_i32_0 : i32, i32, i32, i32
  }
  func.func @transform_3(%arg0: i32, %arg1: i32) -> (i32, i32, i32) {
    %c0_i32 = arith.constant 0 : i32
    %c0_i32_0 = arith.constant 0 : i32
    %c0_i32_1 = arith.constant 0 : i32
    %c0_i32_2 = arith.constant 0 : i32
    return %c0_i32, %c0_i32_0, %c0_i32_1 : i32, i32, i32
  }
  func.func @transform_4(%arg0: i32, %arg1: i32) -> (i32, i32) {
    %c0_i32 = arith.constant 0 : i32
    %c0_i32_0 = arith.constant 0 : i32
    %c0_i32_1 = arith.constant 0 : i32
    return %c0_i32, %c0_i32_0 : i32, i32
  }
  func.func @transform_5(%arg0: i32, %arg1: i32) -> (i32, i32, i32, i32) {
    %c0_i32 = arith.constant 0 : i32
    %c0_i32_0 = arith.constant 0 : i32
    %c0_i32_1 = arith.constant 0 : i32
    return %arg0, %arg1, %c0_i32, %c0_i32_0 : i32, i32, i32, i32
  }
}

</mosaic_0001>

<bundles_post_ra>
// kernel: conv2d_batchnorm_relu.1
= control target key start
LH: loop header
LB: loop body
LE: loop exit
PB: predicated region body
PF: predicated region fallthrough
CT: control target
= control target key end

     0   :  { %s3448_s18 = smov 0   ;;  %s3450_s19 = smov 0   ;;  %s4697_s0 = inlined_call_operand.vmem [shape: f32[2,16,16,4], index: 0, kind: input, shape index: {}, may-alias: {0,1,2}]   ;;  %s4698_s1 = inlined_call_operand.vmem [shape: f32[2,16,16,4], index: 1, kind: input, shape index: {}, may-alias: {0,1,2}]   ;;  %s4699_s2 = inlined_call_operand.vmem [shape: f32[2,16,16,4], index: 2, kind: input, shape index: {}, may-alias: {0,1,2}]   ;;  %s4700_s3 = inlined_call_operand.vmem [shape: bf16[3,12,128], index: 3, kind: input, shape index: {}]   ;;  %s4701_s4 = inlined_call_operand.vmem [shape: f32[1,128], index: 4, kind: input, shape index: {}]   ;;  %s4702_s5 = inlined_call_operand.vmem [shape: f32[2,16,16,128], index: 5, kind: output, shape index: {}]  }
   0x1   :  { %s3452_s20 = smov 0  }
   0x2 LB: > { %s27_s21 = sadd.s32 1, %s3408_s19  ;;  %p2809_p0 = scmp.ge.s32.totalorder %s3412_s20, 1  ;;  %s3412_s20 = sphi %s3452_s20, %s15_s20   ;;  %s3408_s19 = sphi %s3450_s19, %s4773_s19   ;;  %s3404_s18 = sphi %s3448_s18, %s4772_s18  }
   0x3   : > { %p29_p1 = scmp.ge.s32.totalorder %s27_s21, 2  ;;  %p273_p2 = scmp.lt.s32.totalorder %s3412_s20, 3 }
   0x5   : > { %s4775_s21 = smov (%p29_p1, %s27_s21), 0  ;;  %p274_p3 = pnand %p2809_p0, %p273_p2 }
   0x6   : > { %p338_p4 = scmp.lt.s32.totalorder (!%p274_p3), %s3404_s18, 1  ;;  %s3414_s26 = smov (!%p274_p3), 4  }
   0x7   : > { %277 = sbr.rel (%p274_p3) target bundleno = 524 (0x20c), region = 40  ;;  %s3415_s27 = smov (!%p274_p3), 8  }
   0xc   : > { %v426_v0 = vlaneseq  ;;  %s4777_s18 = smov (!%p338_p4, %s3404_s18), 1 }
   0xd   : > { %s3468_s22 = sshll.u32 %s4777_s18, 8 }
   0xe   : > { %v3466_v1 = vshrl.u32 %v426_v0, 7  ;;  %s3476_s25 = scalar_lea.vmem %s4697_s0, %s3468_s22  ;;  %s2947_s30 = sadd.s32 240, %s3468_s22 }
   0xf   : > { %v3479_v4 = vld [vmem:[%s3476_s25 + $0x10] sm:$0xff]  ;;  %v3482_v5 = vld [vmem:[%s3476_s25 + $0x18] sm:$0xff]  ;;  %v3485_v6 = vld [vmem:[%s3476_s25] sm:$0xff]  ;;  %s360_s8 = scalar_lea.vmem %s4698_s1, %s3468_s22  ;;  %s377_s11 = scalar_lea.vmem %s4699_s2, %s2947_s30 }
  0x10   : > { %v448_v2 = vadd.s32 168, %v3466_v1  ;;  %v428_v3 = vadd.s32 8, %v3466_v1  ;;  %v450_v7 = vadd.s32 184, %v3466_v1  ;;  %v3215_v8 = vpack.i.bf16 %v3482_v5, %v3479_v4  ;;  %v3491_v9 = vld [vmem:[%s3476_s25 + $0x8] sm:$0xff]  ;;  %v3494_v10 = vld [vmem:[%s3476_s25 + $0xb0] sm:$0xff]  ;;  %v3497_v11 = vld [vmem:[%s3476_s25 + $0xb8] sm:$0xff]  ;;  %s4592_s28 = scalar_lea.vmem %s4702_s5, %s3468_s22 }
  0x11   : > { %v1070_v13 = vrot.slane %v3479_v4, 1  ;;  %v1069_v14 = vrot.slane %v3491_v9, 1  ;;  %v3205_v15 = vpack.i.bf16 %v3491_v9, %v3485_v6  ;;  %v3504_v16 = vld [vmem:[%s3476_s25 + $0xa0] sm:$0xff]  ;;  %v3507_v17 = vld [vmem:[%s3476_s25 + $0xa8] sm:$0xff]  ;;  %v1068_v19 = vrot.slane %v3485_v6, 1  ;;  %v3567_v49 = vld [vmem:[%s3476_s25 + $0xd0] sm:$0xff] }
  0x12   : > { %v610_v12 = vand.u32 15, %v448_v2  ;;  %v470_v18 = vand.u32 15, %v428_v3  ;;  %3216 = vrot.lane.b32.xlu1 %v3215_v8, %s3414_s26  ;;  %vm1100_vm0 = vcmp.lt.s32.totalorder %v3466_v1, 7  ;;  %v430_v20 = vadd.s32 24, %v3466_v1  ;;  %v3524_v29 = vld [vmem:[%s3476_s25 + $0xc0] sm:$0xff]  ;;  %v3572_v53 = vld [vmem:[%s3476_s25 + $0xc8] sm:$0xff] }
  0x13   : > { %v1071_v21 = vrot.slane %v3482_v5, 1  ;;  %3206 = vrot.lane.b32.xlu0 %v3205_v15, %s3414_s26  ;;  %v3220_v22 = vpack.i.bf16 %v3497_v11, %v3494_v10  ;;  %v1090_v23 = vrot.slane %v3494_v10, 1  ;;  %v624_v24 = vand.u32 15, %v450_v7  ;;  %v3537_v33 = vld [vmem:[%s3476_s25 + $0x20] sm:$0xff]  ;;  %v3575_v54 = vld [vmem:[%s3476_s25 + $0x30] sm:$0xff]  ;;  %v3580_v58 = vld [vmem:[%s3476_s25 + $0x28] sm:$0xff] }
  0x14   : > { %v1091_v25 = vrot.slane %v3497_v11, 1  ;;  %v1089_v26 = vrot.slane %v3507_v17, 1  ;;  %v3210_v27 = vpack.i.bf16 %v3507_v17, %v3504_v16  ;;  %v1088_v28 = vrot.slane %v3504_v16, 1  ;;  %v3586_v62 = vld [vmem:[%s3476_s25 + $0xe0] sm:$0xff]  ;;  %v3592_v0 = vld [vmem:[%s3476_s25 + $0xd8] sm:$0xff] }
  0x15   : > { %vm1057_vm1 = vcmp.eq.s32.totalorder %v610_v12, 15  ;;  %vm3526_vm2 = vcmp.eq.s32.totalorder %v470_v18, 15  ;;  %v1130_v31 = vsel %vm1100_vm0, %v1069_v14, %v1070_v13  ;;  %v1131_v32 = vsel %vm1100_vm0, %v1068_v19, %v1069_v14  ;;  %v3600_v12 = vld [vmem:[%s3476_s25 + $0x38] sm:$0xff] }
  0x16   : > { %3221 = vrot.lane.b32.xlu1 %v3220_v22, %s3414_s26  ;;  %v1110_v34 = vsel %vm1100_vm0, %v1089_v26, %v1090_v23  ;;  %v1111_v35 = vsel %vm1100_vm0, %v1088_v28, %v1089_v26  ;;  %v1198_v36 = vsel %vm3526_vm2, 0.0, %v1130_v31  ;;  %vm3549_vm3 = vcmp.eq.s32.totalorder %v624_v24, 15 }
  0x17   : > { %3211 = vrot.lane.b32.xlu0 %v3210_v27, %s3414_s26  ;;  %v1218_v37 = vsel %vm1057_vm1, 0.0, %v1110_v34  ;;  %v3225_v38 = vpack.i.bf16 %v1198_v36, %v1131_v32  ;;  %v1092_v40 = vrot.slane %v3524_v29, 1  ;;  %v1109_v42 = vsel %vm1100_vm0, %v1090_v23, %v1091_v25 }
  0x18   : > { %v3230_v41 = vpack.i.bf16 %v1218_v37, %v1111_v35  ;;  %v484_v43 = vand.u32 15, %v430_v20  ;;  %v1072_v44 = vrot.slane %v3537_v33, 1  ;;  %v1129_v46 = vsel %vm1100_vm0, %v1070_v13, %v1071_v21 }
  0x19   : > { %v1108_v45 = vsel %vm1100_vm0, %v1091_v25, %v1092_v40  ;;  %v452_v50 = vadd.s32 200, %v3466_v1  ;;  %v432_v55 = vadd.s32 40, %v3466_v1  ;;  %v1093_v57 = vrot.slane %v3572_v53, 1 }
  0x1a   : > { %3231 = vrot.lane.b32.xlu1 %v3230_v41, %s3415_s27  ;;  %v1220_v47 = vsel %vm3549_vm3, 0.0, %v1108_v45  ;;  %vm1039_vm4 = vcmp.eq.s32.totalorder %v484_v43, 15  ;;  %v1128_v48 = vsel %vm1100_vm0, %v1071_v21, %v1072_v44  ;;  %v454_v59 = vadd.s32 216, %v3466_v1  ;;  %v3610_v21 = vld [vmem:[%s3476_s25 + $0x40] sm:$0xff] }
  0x1b   : > { %3226 = vrot.lane.b32.xlu0 %v3225_v38, %s3415_s27  ;;  %v3240_v51 = vpack.i.bf16 %v1220_v47, %v1109_v42  ;;  %v1200_v52 = vsel %vm1039_vm4, 0.0, %v1128_v48  ;;  %v1073_v60 = vrot.slane %v3580_v58, 1  ;;  %v1094_v61 = vrot.slane %v3567_v49, 1  ;;  %v3654_v47 = vld [vmem:[%s3476_s25 + $0xf0] sm:$0xff] }
  0x1c   : > { %v3235_v56 = vpack.i.bf16 %v1200_v52, %v1129_v46  ;;  %v3250_v63 = vpack.i.bf16 %v3572_v53, %v3524_v29  ;;  %v1074_v2 = vrot.slane %v3575_v54, 1  ;;  %v638_v3 = vand.u32 15, %v452_v50 }
  0x1d   : > { %v3245_v7 = vpack.i.bf16 %v3580_v58, %v3537_v33  ;;  %v1095_v8 = vrot.slane %v3592_v0, 1  ;;  %v498_v13 = vand.u32 15, %v432_v55  ;;  %v1106_v15 = vsel %vm1100_vm0, %v1093_v57, %v1094_v61 }
  0x1e   : > { %3241 = vrot.lane.b32.xlu1 %v3240_v51, %s3415_s27  ;;  %vm3602_vm5 = vcmp.eq.s32.totalorder %v638_v3, 15  ;;  %v652_v18 = vand.u32 15, %v454_v59  ;;  %v1096_v20 = vrot.slane %v3586_v62, 1  ;;  %v1075_v22 = vrot.slane %v3600_v12, 1  ;;  %v3659_v51 = vld [vmem:[%s3476_s25 + $0x50] sm:$0xff]  ;;  %v3668_v59 = vld [vmem:[%s3476_s25 + $0x48] sm:$0xff] }
  0x1f   : > { %3236 = vrot.lane.b32.xlu0 %v3235_v56, %s3415_s27  ;;  %vm3613_vm6 = vcmp.eq.s32.totalorder %v498_v13, 15  ;;  %v1126_v24 = vsel %vm1100_vm0, %v1073_v60, %v1074_v2  ;;  %v434_v25 = vadd.s32 56, %v3466_v1  ;;  %v3260_v26 = vpack.i.bf16 %v3592_v0, %v3567_v49  ;;  %v3664_v56 = vld [vmem:[%s3476_s25 + $0xe8] sm:$0xff] }
  0x20   : > { %v3255_v27 = vpack.i.bf16 %v3600_v12, %v3575_v54  ;;  %v1107_v31 = vsel %vm1100_vm0, %v1092_v40, %v1093_v57  ;;  %v1222_v32 = vsel %vm3602_vm5, 0.0, %v1106_v15  ;;  %v1076_v35 = vrot.slane %v3610_v21, 1  ;;  %v3680_v15 = vld [vmem:[%s3476_s25 + $0xf8] sm:$0xff] }
  0x21   : > { %v512_v34 = vand.u32 15, %v434_v25  ;;  %v1127_v36 = vsel %vm1100_vm0, %v1072_v44, %v1073_v60  ;;  %v1202_v37 = vsel %vm3613_vm6, 0.0, %v1126_v24  ;;  %vm1063_vm7 = vcmp.eq.s32.totalorder %v652_v18, 15  ;;  %v3683_v18 = vld [vmem:[%s3476_s25 + $0x60] sm:$0xff] }
  0x22   : > { %3251 = vrot.lane.b32.xlu1 %v3250_v63, %s3414_s26  ;;  %v1104_v38 = vsel %vm1100_vm0, %v1095_v8, %v1096_v20  ;;  %v1124_v40 = vsel %vm1100_vm0, %v1075_v22, %v1076_v35  ;;  %v3270_v41 = vpack.i.bf16 %v1222_v32, %v1107_v31  ;;  %v3265_v42 = vpack.i.bf16 %v1202_v37, %v1127_v36 }
  0x23   : > { %3246 = vrot.lane.b32.xlu0 %v3245_v7, %s3414_s26  ;;  %vm3639_vm8 = vcmp.eq.s32.totalorder %v512_v34, 15  ;;  %v1105_v43 = vsel %vm1100_vm0, %v1094_v61, %v1095_v8  ;;  %v1224_v44 = vsel %vm1063_vm7, 0.0, %v1104_v38  ;;  %v1125_v45 = vsel %vm1100_vm0, %v1074_v2, %v1075_v22 }
  0x24   : > { %v1204_v46 = vsel %vm3639_vm8, 0.0, %v1124_v40  ;;  %v456_v48 = vadd.s32 232, %v3466_v1  ;;  %v3280_v50 = vpack.i.bf16 %v1224_v44, %v1105_v43  ;;  %v436_v52 = vadd.s32 72, %v3466_v1 }
  0x25   : > { %v3275_v55 = vpack.i.bf16 %v1204_v46, %v1125_v45  ;;  %v1097_v57 = vrot.slane %v3664_v56, 1  ;;  %v1098_v60 = vrot.slane %v3654_v47, 1  ;;  %v458_v63 = vadd.s32 248, %v3466_v1 }
  0x26   : > { %3261 = vrot.lane.b32.xlu1 %v3260_v26, %s3414_s26  ;;  %v666_v61 = vand.u32 15, %v456_v48  ;;  %v1077_v2 = vrot.slane %v3668_v59, 1  ;;  %v1078_v3 = vrot.slane %v3659_v51, 1  ;;  %v526_v7 = vand.u32 15, %v436_v52  ;;  %v3692_v26 = vld [vmem:[%s3476_s25 + $0x58] sm:$0xff] }
  0x27   : > { %3256 = vrot.lane.b32.xlu0 %v3255_v27, %s3414_s26  ;;  %v438_v8 = vadd.s32 88, %v3466_v1  ;;  %v4704_v13 = vrot.slane %v3482_v5, 7  ;;  %v3290_v14 = vpack.i.bf16 %v3664_v56, %v3586_v62  ;;  %v877_v22 = vrot.slane %v3479_v4, 7 }
  0x28   : > { %v876_v23 = vrot.slane %v3491_v9, 7  ;;  %v3285_v24 = vpack.i.bf16 %v3668_v59, %v3610_v21  ;;  %v1099_v25 = vrot.slane %v3680_v15, 1  ;;  %v1079_v27 = vrot.slane %v3692_v26, 1 }
  0x29   : > { %vm3695_vm9 = vcmp.eq.s32.totalorder %v666_v61, 15  ;;  %v1102_v32 = vsel %vm1100_vm0, %v1097_v57, %v1098_v60  ;;  %v680_v34 = vand.u32 15, %v458_v63  ;;  %vm3701_vm10 = vcmp.eq.s32.totalorder %v526_v7, 15  ;;  %v3746_v61 = vld [vmem:[%s3476_s25 + $0x78] sm:$0xff]  ;;  %v3749_v63 = vld [vmem:[%s3476_s25 + $0x80] sm:$0xff] }
  0x2a   : > { %3271 = vrot.lane.b32.xlu1 %v3270_v41, %s3415_s27  ;;  %v1122_v37 = vsel %vm1100_vm0, %v1077_v2, %v1078_v3  ;;  %v540_v38 = vand.u32 15, %v438_v8  ;;  %v1080_v39 = vrot.slane %v3683_v18, 1  ;;  %v875_v40 = vrot.slane %v3485_v6, 7 }
  0x2b   : > { %3266 = vrot.lane.b32.xlu0 %v3265_v42, %s3415_s27  ;;  %v4705_v41 = vrot.slane %v3497_v11, 7  ;;  %v897_v42 = vrot.slane %v3494_v10, 7  ;;  %v3300_v43 = vpack.i.bf16 %v3680_v15, %v3654_v47  ;;  %v3295_v44 = vpack.i.bf16 %v3692_v26, %v3659_v51 }
  0x2c   : > { %v1103_v45 = vsel %vm1100_vm0, %v1096_v20, %v1097_v57  ;;  %v1226_v46 = vsel %vm3695_vm9, 0.0, %v1102_v32  ;;  %v1123_v10 = vsel %vm1100_vm0, %v1076_v35, %v1077_v2  ;;  %v1206_v48 = vsel %vm3701_vm10, 0.0, %v1122_v37 }
  0x2d   : > { %vm3727_vm11 = vcmp.eq.s32.totalorder %v680_v34, 15  ;;  %v1132_v20 = vsel %vm1100_vm0, %v1099_v25, %v1068_v19  ;;  %v442_v52 = vadd.s32 120, %v3466_v1  ;;  %vm3737_vm12 = vcmp.eq.s32.totalorder %v540_v38, 15 }
  0x2e   : > { %3281 = vrot.lane.b32.xlu1 %v3280_v50, %s3415_s27  ;;  %v1120_v57 = vsel %vm1100_vm0, %v1079_v27, %v1080_v39  ;;  %v440_v2 = vadd.s32 104, %v3466_v1  ;;  %v895_v19 = vrot.slane %v3504_v16, 7  ;;  %v3310_v8 = vpack.i.bf16 %v1226_v46, %v1103_v45 }
  0x2f   : > { %3276 = vrot.lane.b32.xlu0 %v3275_v55, %s3415_s27  ;;  %v896_v55 = vrot.slane %v3507_v17, 7  ;;  %v902_v17 = vrot.slane %v3592_v0, 7  ;;  %v3305_v31 = vpack.i.bf16 %v1206_v48, %v1123_v10  ;;  %v1101_v32 = vsel %vm1100_vm0, %v1098_v60, %v1099_v25  ;;  %v3781_v48 = vld [vmem:[%s3476_s25 + $0x98] sm:$0xff] }
  0x30   : > { %v1228_v34 = vsel %vm3727_vm11, 0.0, %v1132_v20  ;;  %v1121_v36 = vsel %vm1100_vm0, %v1078_v3, %v1079_v27  ;;  %v1208_v37 = vsel %vm3737_vm12, 0.0, %v1120_v57  ;;  %v1083_v38 = vrot.slane %v3746_v61, 1 }
  0x31   : > { %v4703_v45 = vrot.slane %v3749_v63, 1  ;;  %v554_v25 = vand.u32 15, %v440_v2  ;;  %v906_v10 = vrot.slane %v3680_v15, 7  ;;  %v3320_v3 = vpack.i.bf16 %v1228_v34, %v1101_v32  ;;  %v3811_v2 = vld [vmem:[%s3476_s25 + $0x90] sm:$0xff] }
  0x32   : > { %3291 = vrot.lane.b32.xlu1 %v3290_v14, %s3414_s26  ;;  %v3757_v14 = vld [vmem:[%s3476_s25 + $0x70] sm:$0xff]  ;;  %vm907_vm13 = vcmp.lt.s32.totalorder %v3466_v1, 1  ;;  %v894_v50 = vrot.slane %v3781_v48, 7  ;;  %v446_v4 = vadd.s32 152, %v3466_v1  ;;  %v444_v34 = vadd.s32 136, %v3466_v1 }
  0x33   : > { %3286 = vrot.lane.b32.xlu0 %v3285_v24, %s3414_s26  ;;  %v3760_v24 = vld [vmem:[%s3476_s25 + $0x68] sm:$0xff]  ;;  %v1082_v46 = vrot.slane %v3757_v14, 1  ;;  %v3330_v27 = vpack.i.bf16 %v3746_v61, %v3757_v14  ;;  %v3792_v20 = vsel %vm907_vm13, %v877_v22, %v4704_v13  ;;  %v1116_v57 = vsel %vm1100_vm0, %v1083_v38, %v4703_v45 }
  0x34   : > { %v1081_v60 = vrot.slane %v3760_v24, 1  ;;  %vm3823_vm15 = vcmp.eq.s32.totalorder %v554_v25, 15  ;;  %v1087_v13 = vrot.slane %v3781_v48, 1  ;;  %v596_v7 = vand.u32 15, %v446_v4 }
  0x35   : > { %v1117_v25 = vsel %vm1100_vm0, %v1082_v46, %v1083_v38  ;;  %vm1706_vm1 = vcmask 1045504   ;;  %v881_v35 = vrot.slane %v3575_v54, 7  ;;  %v4736_v4 = vrot.slane %v3497_v11, 7  ;;  %v1573_v54 = vld [vmem:[%s360_s8] sm:$0xff] }
  0x36   : > { %3301 = vrot.lane.b32.xlu1 %v3300_v43, %s3414_s26  ;;  %v568_v43 = vand.u32 15, %v442_v52  ;;  %v3800_v52 = vsel %vm907_vm13, %v876_v23, %v877_v22  ;;  %v3821_v22 = vsel %vm907_vm13, %v897_v42, %v4705_v41  ;;  %v1118_v32 = vsel %vm1100_vm0, %v1081_v60, %v1082_v46 }
  0x37   : > { %3296 = vrot.lane.b32.xlu0 %v3295_v44, %s3414_s26  ;;  %v901_v44 = vrot.slane %v3567_v49, 7  ;;  %v3315_v49 = vpack.i.bf16 %v1208_v37, %v1121_v36  ;;  %v3832_v36 = vsel %vm907_vm13, %v896_v55, %v897_v42  ;;  %v3385_v37 = vld [vmem:[%s4700_s3 + $0x8] sm:$0x3f]   ;;  %v1119_v45 = vsel %vm1100_vm0, %v1080_v39, %v1081_v60 }
  0x38   : > { %vm3802_vm14 = vcmp.eq.s32.totalorder %v568_v43, 15  ;;  %v3325_v43 = vpack.i.bf16 %v3760_v24, %v3683_v18  ;;  %v3848_v42 = vsel %vm907_vm13, %v895_v19, %v896_v55  ;;  %v1086_v41 = vrot.slane %v3811_v2, 1  ;;  %3175 = vmatprep.subr.msk.bf16.mxu0 %vm1706_vm1, %v3385_v37  ;;  %3176 = vmatprep.subr.msk.bf16.mxu1 %vm1706_vm1, %v3385_v37 }
  0x39   : > { %v1210_v46 = vsel %vm3823_vm15, 0.0, %v1118_v32  ;;  %v3862_v39 = vsel %vm907_vm13, %v894_v50, %v895_v19  ;;  %v880_v55 = vrot.slane %v3580_v58, 7  ;;  %v582_v60 = vand.u32 15, %v444_v34 }
  0x3a   : > { %3311 = vrot.lane.b32.xlu1 %v3310_v8, %s3415_s27  ;;  %v3814_v8 = vld [vmem:[%s3476_s25 + $0x88] sm:$0xff]  ;;  %v3881_v58 = vsel %vm907_vm13, %v906_v10, %v875_v40  ;;  %v882_v19 = vrot.slane %v3600_v12, 7  ;;  %v1112_v6 = vsel %vm1100_vm0, %v1087_v13, %v1088_v28  ;;  %v879_v12 = vrot.slane %v3537_v33, 7 }
  0x3b   : > { %3306 = vrot.lane.b32.xlu0 %v3305_v31, %s3415_s27  ;;  %v1085_v38 = vrot.slane %v3814_v8, 1  ;;  %vm3894_vm3 = vcmp.eq.s32.totalorder %v596_v7, 15  ;;  %v3904_v16 = vsel %vm907_vm13, %v901_v44, %v902_v17  ;;  %v4732_v28 = vrot.slane %v3572_v53, 7 }
  0x3c   : > { %vm3912_vm4 = vcmp.eq.s32.totalorder %v582_v60, 15  ;;  %v904_v32 = vrot.slane %v3664_v56, 7  ;;  %v3350_v53 = vpack.i.bf16 %v3781_v48, %v3811_v2  ;;  %v3345_v34 = vpack.i.bf16 %v3814_v8, %v3749_v63 }
  0x3d   : > { %v4735_v7 = vmov %v4732_v28  ;;  %v4737_v11 = vrot.slane %v3482_v5, 7  ;;  %v1216_v56 = vsel %vm3894_vm3, 0.0, %v1112_v6  ;;  %v884_v5 = vrot.slane %v3668_v59, 7 }
  0x3e   : > { %3321 = vrot.lane.b32.xlu1 %v3320_v3, %s3415_s27  ;;  %v1212_v3 = vsel %vm3802_vm14, 0.0, %v1116_v57  ;;  %v1708_v57 = vsel %vm1706_vm1, %v3385_v37, 0  ;;  %v890_v59 = vrot.slane %v3746_v61, 7  ;;  %v893_v0 = vrot.slane %v3811_v2, 7 }
  0x3f   : > { %3316 = vrot.lane.b32.xlu0 %v3315_v49, %s3415_s27  ;;  %v3873_v49 = vsel %vm907_vm13, %v875_v40, %v876_v23  ;;  %v3340_v9 = vpack.i.bf16 %v1212_v3, %v1117_v25  ;;  %v3335_v23 = vpack.i.bf16 %v1210_v46, %v1119_v45  ;;  %3004 = vmatpush3.bf16.msra.mxu0 %v1708_v57  ;;  %v899_v40 = vrot.slane %v3524_v29, 7 }
  0x40   : > { %3174 = vmatpush3.bf16.msra.mxu1 %v1708_v57  ;;  %v3910_v29 = vsel %vm907_vm13, %v4732_v28, %v901_v44  ;;  %v3930_v44 = vsel %vm907_vm13, %v879_v12, %v880_v55  ;;  %v3942_v37 = vsel %vm907_vm13, %v4737_v11, %v879_v12  ;;  %v3951_v25 = vsel %vm907_vm13, %v881_v35, %v882_v19 }
  0x41   : > { %v3920_v45 = vsel %vm907_vm13, %v899_v40, %v4735_v7  ;;  %v3926_v31 = vsel %vm907_vm13, %v4736_v4, %v899_v40  ;;  %v3955_v3 = vsel %vm907_vm13, %v880_v55, %v881_v35  ;;  %v4738_v46 = vrot.slane %v3749_v63, 1  ;;  %v1612_v4 = vld [vmem:[%s377_s11 + $0x8] sm:$0xff] }
  0x42   : > { %3331 = vrot.lane.b32.xlu1 %v3330_v27, %s3414_s26  ;;  %v1114_v27 = vsel %vm1100_vm0, %v1085_v38, %v1086_v41  ;;  %v903_v57 = vrot.slane %v3586_v62, 7  ;;  %v885_v55 = vrot.slane %v3659_v51, 7  ;;  %v888_v51 = vrot.slane %v3760_v24, 7 }
  0x43   : > { %3326 = vrot.lane.b32.xlu0 %v3325_v43, %s3414_s26  ;;  %v1113_v43 = vsel %vm1100_vm0, %v1086_v41, %v1087_v13  ;;  %v1115_v60 = vsel %vm1100_vm0, %v4738_v46, %v1085_v38  ;;  %v1214_v13 = vsel %vm3912_vm4, 0.0, %v1114_v27  ;;  %v905_v41 = vrot.slane %v3654_v47, 7  ;;  %v1574_v27 = vld [vmem:[%s360_s8 + $0x8] sm:$0xff] }
  0x44   : > { %v3360_v35 = vpack.i.bf16 %v1216_v56, %v1113_v43  ;;  %v889_v38 = vrot.slane %v3757_v14, 7  ;;  %v3355_v6 = vpack.i.bf16 %v1214_v13, %v1115_v60  ;;  %v3975_v47 = vsel %vm907_vm13, %v903_v57, %v904_v32 }
  0x45   : > { %v3981_v62 = vsel %vm907_vm13, %v902_v17, %v903_v57  ;;  %v3999_v17 = vsel %vm907_vm13, %v905_v41, %v906_v10  ;;  %v4004_v14 = vsel %vm907_vm13, %v904_v32, %v905_v41  ;;  %v4014_v15 = vsel %vm907_vm13, %v884_v5, %v885_v55 }
  0x46   : > { %3341 = vrot.lane.b32.xlu1 %v3340_v9, %s3415_s27  ;;  %v886_v9 = vrot.slane %v3692_v26, 7  ;;  %v4018_v10 = vsel %vm907_vm13, %v889_v38, %v890_v59  ;;  %v892_v2 = vrot.slane %v3814_v8, 7  ;;  %v887_v40 = vrot.slane %v3683_v18, 7 }
  0x47   : > { %3336 = vrot.lane.b32.xlu0 %v3335_v23, %s3415_s27  ;;  %v883_v23 = vrot.slane %v3610_v21, 7  ;;  %v4706_v21 = vmov 0.0   ;;  %v4034_v12 = vsel %vm907_vm13, %v893_v0, %v894_v50  ;;  %v1611_v50 = vld [vmem:[%s377_s11] sm:$0xff]  ;;  %v891_v28 = vrot.slane %v3749_v63, 7 }
  0x48   : > { %3037 = vmatprep.subr.bf16.mxu1 %v4706_v21  ;;  %3099 = vmatprep.subr.bf16.mxu0 %v4706_v21  ;;  %v4008_v24 = vsel %vm907_vm13, %v885_v55, %v886_v9  ;;  %v4041_v8 = vsel %vm907_vm13, %v887_v40, %v888_v51  ;;  %v4045_v18 = vsel %vm907_vm13, %v886_v9, %v887_v40  ;;  %v4052_v33 = vmul.f32 0.0, %v1573_v54 }
  0x49   : > { %v3987_v26 = vsel %vm907_vm13, %v883_v23, %v884_v5  ;;  %v3991_v61 = vsel %vm907_vm13, %v882_v19, %v883_v23  ;;  %v4023_v19 = vsel %vm907_vm13, %v888_v51, %v889_v38  ;;  %v4049_v48 = vsel %vm907_vm13, %v892_v2, %v893_v0 }
  0x4a   : > { %3351 = vrot.lane.b32.xlu1 %v3350_v53, %s3414_s26  ;;  %v4054_v7 = vmul.f32 0.0, %v1574_v27  ;;  %v4058_v32 = vsel %vm907_vm13, %v891_v28, %v892_v2  ;;  %v4062_v53 = vsel %vm907_vm13, %v890_v59, %v891_v28  ;;  %v1584_v63 = vrot.slane %v4052_v33, 1 }
  0x4b   : > { %3346 = vrot.lane.b32.xlu0 %v3345_v34, %s3414_s26  ;;  %v4064_v34 = vmul.f32 0.0, %v1611_v50  ;;  %v4070_v56 = vmul.f32 0.0, %v1612_v4  ;;  %v429_v38 = vadd.s32 16, %v3466_v1  ;;  %v447_v51 = vadd.s32 160, %v3466_v1 }
  0x4c   : > { %v3365_v11 = vpack.i.bf16 %v4054_v7, %v4052_v33  ;;  %v1585_v43 = vrot.slane %v4054_v7, 1  ;;  %v463_v27 = vand.u32 15, %v3466_v1  ;;  %vm1485_vm7 = vcmask 31744  }
  0x4d   : > { %v1622_v5 = vrot.slane %v4064_v34, 1  ;;  %v3375_v41 = vpack.i.bf16 %v4070_v56, %v4064_v34  ;;  %v1623_v9 = vrot.slane %v4070_v56, 1  ;;  %v477_v0 = vand.u32 15, %v429_v38 }
  0x4e   : > { %3361 = vrot.lane.b32.xlu1 %v3360_v35, %s3415_s27  ;;  %v1586_v46 = vsel %vm1100_vm0, %v1584_v63, %v1585_v43  ;;  %v1587_v60 = vsel %vm1100_vm0, %v1585_v43, %v1584_v63  ;;  %v603_v40 = vand.u32 15, %v447_v51  ;;  %vm4111_vm6 = vcmp.eq.s32.totalorder %v463_v27, 0 }
  0x4f   : > { %3356 = vrot.lane.b32.xlu0 %v3355_v6, %s3415_s27  ;;  %v1589_v13 = vsel %vm3526_vm2, 0.0, %v1587_v60  ;;  %v1624_v23 = vsel %vm1100_vm0, %v1622_v5, %v1623_v9  ;;  %v1625_v55 = vsel %vm1100_vm0, %v1623_v9, %v1622_v5  ;;  %v449_v6 = vadd.s32 176, %v3466_v1 }
  0x50   : > { %v3370_v57 = vpack.i.bf16 %v1589_v13, %v1586_v46  ;;  %v1627_v59 = vsel %vm3526_vm2, 0.0, %v1625_v55  ;;  %vm4096_vm0 = vcmp.eq.s32.totalorder %v477_v0, 0  ;;  %vm4104_vm5 = vcmp.eq.s32.totalorder %v603_v40, 0 }
  0x51   : > { %v3380_v35 = vpack.i.bf16 %v1627_v59, %v1624_v23  ;;  %v617_v2 = vand.u32 15, %v449_v6  ;;  %v4116_v5 = vadd.s32 32, %v3466_v1  ;;  %v1006_v46 = vsel %vm4096_vm0, 0.0, %v3800_v52 }
  0x52   : > { %3371 = vrot.lane.b32.xlu1 %v3370_v57, %s3415_s27  ;;  %vm1518_vm8 = vcmask 64512   ;;  %vm1657_vm9 = vcmask 97280   ;;  %v1004_v59 = vsel %vm4111_vm6, 0.0, %v3881_v58  ;;  %v453_v51 = vadd.s32 208, %v3466_v1 }
  0x53   : > { %3366 = vrot.lane.b32.xlu0 %v3365_v11, %s3414_s26  ;;  %vm4100_vm2 = vcmp.eq.s32.totalorder %v617_v2, 0  ;;  %v4109_v11 = vadd.s32 192, %v3466_v1  ;;  %v491_v6 = vand.u32 15, %v4116_v5 }
  0x54   : > { %v1026_v60 = vsel %vm4100_vm2, 0.0, %v3832_v36 }
  0x55   : > { %v631_v52 = vand.u32 15, %v4109_v11  ;;  %vm4180_vm11 = vcmp.eq.s32.totalorder %v491_v6, 0  ;;  %v4753_v6 = vmov 0.0  }
  0x56   : > { %3381 = vrot.lane.b32.xlu1 %v3380_v35, %s3415_s27 }
  0x57   : > { %3376 = vrot.lane.b32.xlu0 %v3375_v41, %s3414_s26  ;;  %v1024_v41 = vsel %vm4104_vm5, 0.0, %v3862_v39  ;;  %vm4174_vm10 = vcmp.eq.s32.totalorder %v631_v52, 0 }
  0x84   : > { %v3217_v54 = vpop.permute.xlu1 %3216 }
  0x85   : > { %v3207_v50 = vpop.permute.xlu0 %3206  ;;  %v3219_v35 = vunpack.i.h.bf16 %v3217_v54  ;;  %v3218_v38 = vunpack.i.l.bf16 %v3217_v54 }
  0x86   : > { %v3209_v23 = vunpack.i.h.bf16 %v3207_v50  ;;  %v3208_v55 = vunpack.i.l.bf16 %v3207_v50 }
  0x88   : > { %v3222_v63 = vpop.permute.xlu1 %3221  ;;  %v1486_v4 = vsel %vm1485_vm7, %v1004_v59, %v3208_v55  ;;  %v1487_v54 = vsel %vm1485_vm7, %v3873_v49, %v3209_v23  ;;  %v433_v23 = vadd.s32 48, %v3466_v1  ;;  %v3387_v59 = vld [vmem:[%s4700_s3 + $0x10] sm:$0x3f]  }
  0x89   : > { %v3212_v13 = vpop.permute.xlu0 %3211  ;;  %v3224_v0 = vunpack.i.h.bf16 %v3222_v63  ;;  %v3223_v39 = vunpack.i.l.bf16 %v3222_v63 }
  0x8a   : > { %v3214_v9 = vunpack.i.h.bf16 %v3212_v13  ;;  %v3213_v57 = vunpack.i.l.bf16 %v3212_v13 }
  0x8c   : > { %v3232_v36 = vpop.permute.xlu1 %3231  ;;  %v1507_v50 = vsel %vm1485_vm7, %v3848_v42, %v3214_v9  ;;  %v1506_v28 = vsel %vm1485_vm7, %v1024_v41, %v3213_v57  ;;  %v645_v42 = vand.u32 15, %v453_v51  ;;  %v3386_v41 = vld [vmem:[%s4700_s3] sm:$0x3f]   ;;  %v1508_v51 = vsel %vm1485_vm7, %v1026_v60, %v3223_v39 }
  0x8d   : > { %v3234_v2 = vunpack.i.h.bf16 %v3232_v36  ;;  %v3233_v40 = vunpack.i.l.bf16 %v3232_v36  ;;  %v3227_v27 = vpop.permute.xlu0 %3226 }
  0x8e   : > { %v3229_v58 = vunpack.i.h.bf16 %v3227_v27  ;;  %v3228_v30 = vunpack.i.l.bf16 %v3227_v27  ;;  %vm4187_vm12 = vcmp.eq.s32.totalorder %v645_v42, 0 }
  0x8f   : > { %v1539_v11 = vsel %vm1518_vm8, %v1506_v28, %v3233_v40  ;;  %v1540_v5 = vsel %vm1518_vm8, %v1507_v50, %v3234_v2  ;;  %v1509_v2 = vsel %vm1485_vm7, %v3821_v22, %v3224_v0  ;;  %v1488_v50 = vsel %vm1485_vm7, %v1006_v46, %v3218_v38 }
  0x90   : > { %v3242_v63 = vpop.permute.xlu1 %3241  ;;  %v1519_v13 = vsel %vm1518_vm8, %v1486_v4, %v3228_v30  ;;  %v1520_v36 = vsel %vm1518_vm8, %v1487_v54, %v3229_v58  ;;  %v4143_v21 = vpack.c.bf16 %v1540_v5, %v1539_v11  ;;  %v1489_v28 = vsel %vm1485_vm7, %v3792_v20, %v3219_v35 }
  0x91   : > { %v3244_v9 = vunpack.i.h.bf16 %v3242_v63  ;;  %v3243_v57 = vunpack.i.l.bf16 %v3242_v63  ;;  %v3237_v55 = vpop.permute.xlu0 %3236  ;;  %v4148_v49 = vpack.c.bf16 %v1520_v36, %v1519_v13  ;;  %v1911_v4 = vsel %vm1706_vm1, %v3386_v41, 0 }
  0x92   : > { %v3239_v40 = vunpack.i.h.bf16 %v3237_v55  ;;  %v3238_v27 = vunpack.i.l.bf16 %v3237_v55  ;;  %3025 = vmatprep.mubr.msk.bf16.mxu1 %vm1657_vm9, %v4143_v21  ;;  %v505_v20 = vand.u32 15, %v433_v23  ;;  %v2166_v35 = vsel %vm1706_vm1, %v3387_v59, 0 }
  0x93   : > { %v1541_v58 = vsel %vm1518_vm8, %v1508_v51, %v3243_v57  ;;  %v1542_v30 = vsel %vm1518_vm8, %v1509_v2, %v3244_v9  ;;  %3005 = vmatprep.mubr.msk.bf16.mxu0 %vm1657_vm9, %v4148_v49  ;;  %v455_v5 = vadd.s32 224, %v3466_v1  ;;  %v435_v41 = vadd.s32 64, %v3466_v1 }
  0x94   : > { %v4166_v22 = vpack.c.bf16 %v1542_v30, %v1541_v58  ;;  %v1522_v60 = vsel %vm1518_vm8, %v1489_v28, %v3239_v40  ;;  %v1521_v0 = vsel %vm1518_vm8, %v1488_v50, %v3238_v27  ;;  %v3252_v39 = vpop.permute.xlu1 %3251  ;;  %v1028_v9 = vsel %vm4174_vm10, 0.0, %v3926_v31 }
  0x95   : > { %v4171_v46 = vpack.c.bf16 %v1522_v60, %v1521_v0  ;;  %v3247_v38 = vpop.permute.xlu0 %3246  ;;  %v3254_v63 = vunpack.i.h.bf16 %v3252_v39  ;;  %v3253_v13 = vunpack.i.l.bf16 %v3252_v39  ;;  %vm4196_vm14 = vcmp.eq.s32.totalorder %v505_v20, 0 }
  0x96   : > { %3026 = vmatmul.mubr.msk.bf16.vlgmr.msra.gmra.mxu1 %vm1657_vm9, %v4166_v22  ;;  %v3249_v57 = vunpack.i.h.bf16 %v3247_v38  ;;  %v3248_v55 = vunpack.i.l.bf16 %v3247_v38  ;;  %v1008_v59 = vsel %vm4180_vm11, 0.0, %v3942_v37  ;;  %v1030_v2 = vsel %vm4187_vm12, 0.0, %v3910_v29 }
  0x97   : > { %3006 = vmatmul.mubr.msk.bf16.vlgmr.msra.gmra.mxu0 %vm1657_vm9, %v4171_v46  ;;  %3038 = vmatpush3.bf16.msra.mxu1 %v1911_v4  ;;  %v659_v51 = vand.u32 15, %v455_v5  ;;  %v1511_v40 = vsel %vm1485_vm7, %v3920_v45, %v3254_v63  ;;  %v1510_v31 = vsel %vm1485_vm7, %v1028_v9, %v3253_v13  ;;  %v1010_v27 = vsel %vm4196_vm14, 0.0, %v3955_v3 }
  0x98   : > { %v3262_v36 = vpop.permute.xlu1 %3261  ;;  %3100 = vmatpush3.bf16.msra.mxu0 %v2166_v35  ;;  %3161 = vmatprep.subr.bf16.mxu1 %v4753_v6  ;;  %v519_v28 = vand.u32 15, %v435_v41  ;;  %v1491_v58 = vsel %vm1485_vm7, %v3930_v44, %v3249_v57  ;;  %v1490_v37 = vsel %vm1485_vm7, %v1008_v59, %v3248_v55  ;;  %v457_v63 = vadd.s32 240, %v3466_v1 }
  0x99   : > { %v3257_v42 = vpop.permute.xlu0 %3256  ;;  %v3264_v0 = vunpack.i.h.bf16 %v3262_v36  ;;  %v3263_v39 = vunpack.i.l.bf16 %v3262_v36  ;;  %v437_v9 = vadd.s32 80, %v3466_v1  ;;  %vm4243_vm15 = vcmp.eq.s32.totalorder %v659_v51, 0 }
  0x9a   : > { %v3259_v38 = vunpack.i.h.bf16 %v3257_v42  ;;  %v3258_v20 = vunpack.i.l.bf16 %v3257_v42  ;;  %vm4249_vm3 = vcmp.eq.s32.totalorder %v519_v28, 0  ;;  %v1032_v28 = vsel %vm4243_vm15, 0.0, %v3981_v62 }
  0x9b   : > { %v1513_v57 = vsel %vm1485_vm7, %v3904_v16, %v3264_v0  ;;  %v1512_v55 = vsel %vm1485_vm7, %v1030_v2, %v3263_v39  ;;  %v533_v0 = vand.u32 15, %v437_v9  ;;  %v441_v39 = vadd.s32 112, %v3466_v1 }
  0x9c   : > { %v3272_v50 = vpop.permute.xlu1 %3271  ;;  %v1493_v59 = vsel %vm1485_vm7, %v3951_v25, %v3259_v38  ;;  %vm3417_vm10 = vmmov 0  }
  0x9d   : > { %v3274_v30 = vunpack.i.h.bf16 %v3272_v50  ;;  %v3273_v60 = vunpack.i.l.bf16 %v3272_v50  ;;  %v3267_v29 = vpop.permute.xlu0 %3266  ;;  %vm4276_vm0 = vcmp.eq.s32.totalorder %v533_v0, 0 }
  0x9e   : > { %v3269_v4 = vunpack.i.h.bf16 %v3267_v29  ;;  %v3268_v45 = vunpack.i.l.bf16 %v3267_v29 }
  0x9f   : > { %v1543_v35 = vsel %vm1518_vm8, %v1510_v31, %v3273_v60  ;;  %v1544_v3 = vsel %vm1518_vm8, %v1511_v40, %v3274_v30  ;;  %v1492_v40 = vsel %vm1485_vm7, %v1010_v27, %v3258_v20  ;;  %v673_v30 = vand.u32 15, %v457_v63 }
  0xa0   : > { %v4217_v54 = vpack.c.bf16 %v1544_v3, %v1543_v35  ;;  %v1523_v11 = vsel %vm1518_vm8, %v1490_v37, %v3268_v45  ;;  %v1524_v44 = vsel %vm1518_vm8, %v1491_v58, %v3269_v4  ;;  %v3282_v5 = vpop.permute.xlu1 %3281  ;;  %v439_v20 = vadd.s32 96, %v3466_v1 }
  0xa1   : > { %v4222_v13 = vpack.c.bf16 %v1524_v44, %v1523_v11  ;;  %v3284_v52 = vunpack.i.h.bf16 %v3282_v5  ;;  %v3283_v36 = vunpack.i.l.bf16 %v3282_v5  ;;  %v3277_v41 = vpop.permute.xlu0 %3276  ;;  %vm4256_vm4 = vcmp.eq.s32.totalorder %v673_v30, 0 }
  0xa2   : > { %v3279_v23 = vunpack.i.h.bf16 %v3277_v41  ;;  %v3278_v42 = vunpack.i.l.bf16 %v3277_v41  ;;  %3029 = vmatprep.mubr.msk.bf16.mxu1 %vm1657_vm9, %v4217_v54  ;;  %v1012_v44 = vsel %vm4249_vm3, 0.0, %v3991_v61  ;;  %v1034_v5 = vsel %vm4256_vm4, 0.0, %v4004_v14 }
  0xa3   : > { %v1545_v31 = vsel %vm1518_vm8, %v1512_v55, %v3283_v36  ;;  %v1546_v50 = vsel %vm1518_vm8, %v1513_v57, %v3284_v52  ;;  %3009 = vmatprep.mubr.msk.bf16.mxu0 %vm1657_vm9, %v4222_v13  ;;  %v561_v63 = vand.u32 15, %v441_v39  ;;  %v4271_v52 = vadd.s32 144, %v3466_v1 }
  0xa4   : > { %v4237_v16 = vpack.c.bf16 %v1546_v50, %v1545_v31  ;;  %v1525_v2 = vsel %vm1518_vm8, %v1492_v40, %v3278_v42  ;;  %v1526_v58 = vsel %vm1518_vm8, %v1493_v59, %v3279_v23  ;;  %v3292_v37 = vpop.permute.xlu1 %3291  ;;  %v547_v57 = vand.u32 15, %v439_v20 }
  0xa5   : > { %v4241_v60 = vpack.c.bf16 %v1526_v58, %v1525_v2  ;;  %v3287_v25 = vpop.permute.xlu0 %3286  ;;  %v3294_v4 = vunpack.i.h.bf16 %v3292_v37  ;;  %v3293_v45 = vunpack.i.l.bf16 %v3292_v37  ;;  %v1014_v30 = vsel %vm4276_vm0, 0.0, %v4014_v15 }
  0xa6   : > { %3030 = vmatmul.mubr.msk.bf16.gmra.mxu1 %vm1657_vm9, %v4237_v16  ;;  %v3289_v35 = vunpack.i.h.bf16 %v3287_v25  ;;  %v3288_v3 = vunpack.i.l.bf16 %v3287_v25  ;;  %vm4294_vm2 = vcmp.eq.s32.totalorder %v561_v63, 0  ;;  %vm4316_vm5 = vcmp.eq.s32.totalorder %v547_v57, 0 }
  0xa7   : > { %3010 = vmatmul.mubr.msk.bf16.gmra.mxu0 %vm1657_vm9, %v4241_v60  ;;  %v1515_v36 = vsel %vm1485_vm7, %v3975_v47, %v3294_v4  ;;  %v1514_v62 = vsel %vm1485_vm7, %v1032_v28, %v3293_v45 }
  0xa8   : > { %v3302_v38 = vpop.permute.xlu1 %3301  ;;  %v1495_v61 = vsel %vm1485_vm7, %v3987_v26, %v3289_v35  ;;  %v1494_v14 = vsel %vm1485_vm7, %v1012_v44, %v3288_v3 }
  0xa9   : > { %v3297_v11 = vpop.permute.xlu0 %3296  ;;  %v3304_v59 = vunpack.i.h.bf16 %v3302_v38  ;;  %v3303_v40 = vunpack.i.l.bf16 %v3302_v38 }
  0xaa   : > { %v3299_v50 = vunpack.i.h.bf16 %v3297_v11  ;;  %v3298_v2 = vunpack.i.l.bf16 %v3297_v11 }
  0xab   : > { %v1517_v38 = vsel %vm1485_vm7, %v3999_v17, %v3304_v59  ;;  %v1516_v15 = vsel %vm1485_vm7, %v1034_v5, %v3303_v40  ;;  %v3388_v40 = vld [vmem:[%s4700_s3] sm:$0x3f]  }
  0xac   : > { %v3312_v9 = vpop.permute.xlu1 %3311  ;;  %v1497_v35 = vsel %vm1485_vm7, %v4008_v24, %v3299_v50  ;;  %v1496_v3 = vsel %vm1485_vm7, %v1014_v30, %v3298_v2 }
  0xad   : > { %v3314_v55 = vunpack.i.h.bf16 %v3312_v9  ;;  %v3313_v23 = vunpack.i.l.bf16 %v3312_v9  ;;  %v3307_v42 = vpop.permute.xlu0 %3306  ;;  %v589_v9 = vand.u32 15, %v4271_v52  ;;  %v1016_v52 = vsel %vm4316_vm5, 0.0, %v4045_v18 }
  0xae   : > { %v3309_v31 = vunpack.i.h.bf16 %v3307_v42  ;;  %v3308_v47 = vunpack.i.l.bf16 %v3307_v42 }
  0xaf   : > { %v1547_v58 = vsel %vm1518_vm8, %v1514_v62, %v3313_v23  ;;  %v1548_v37 = vsel %vm1518_vm8, %v1515_v36, %v3314_v55  ;;  %v1018_v23 = vsel %vm4294_vm2, 0.0, %v4023_v19  ;;  %vm4337_vm11 = vcmp.eq.s32.totalorder %v589_v9, 0 }
  0xb0   : > { %v4288_v26 = vpack.c.bf16 %v1548_v37, %v1547_v58  ;;  %v1527_v25 = vsel %vm1518_vm8, %v1494_v14, %v3308_v47  ;;  %v1528_v27 = vsel %vm1518_vm8, %v1495_v61, %v3309_v31  ;;  %v3322_v29 = vpop.permute.xlu1 %3321  ;;  %v443_v61 = vadd.s32 128, %v3466_v1 }
  0xb1   : > { %v4292_v0 = vpack.c.bf16 %v1528_v27, %v1527_v25  ;;  %v3324_v39 = vunpack.i.h.bf16 %v3322_v29  ;;  %v3323_v4 = vunpack.i.l.bf16 %v3322_v29  ;;  %v3317_v45 = vpop.permute.xlu0 %3316 }
  0xb2   : > { %v3319_v20 = vunpack.i.h.bf16 %v3317_v45  ;;  %v3318_v28 = vunpack.i.l.bf16 %v3317_v45  ;;  %3033 = vmatprep.mubr.msk.bf16.mxu1 %vm1657_vm9, %v4288_v26  ;;  %v575_v2 = vand.u32 15, %v443_v61 }
  0xb3   : > { %v1550_v11 = vsel %vm1518_vm8, %v1517_v38, %v3324_v39  ;;  %v1549_v44 = vsel %vm1518_vm8, %v1516_v15, %v3323_v4  ;;  %3013 = vmatprep.mubr.msk.bf16.mxu0 %vm1657_vm9, %v4292_v0  ;;  %v2424_v38 = vsel %vm1706_vm1, %v3388_v40, 0 }
  0xb4   : > { %v4310_v17 = vpack.c.bf16 %v1550_v11, %v1549_v44  ;;  %v1529_v5 = vsel %vm1518_vm8, %v1496_v3, %v3318_v28  ;;  %v1530_v63 = vsel %vm1518_vm8, %v1497_v35, %v3319_v20  ;;  %v3332_v36 = vpop.permute.xlu1 %3331  ;;  %vm4354_vm12 = vcmp.eq.s32.totalorder %v575_v2, 0 }
  0xb5   : > { %v4314_v62 = vpack.c.bf16 %v1530_v63, %v1529_v5  ;;  %v3327_v41 = vpop.permute.xlu0 %3326  ;;  %v3334_v14 = vunpack.i.h.bf16 %v3332_v36  ;;  %v3333_v55 = vunpack.i.l.bf16 %v3332_v36  ;;  %v1022_v3 = vsel %vm4337_vm11, 0.0, %v4049_v48 }
  0xb6   : > { %3034 = vmatmul.mubr.msk.bf16.gmra.mxu1 %vm1657_vm9, %v4310_v17  ;;  %v3329_v42 = vunpack.i.h.bf16 %v3327_v41  ;;  %v3328_v59 = vunpack.i.l.bf16 %v3327_v41  ;;  %v1020_v5 = vsel %vm4354_vm12, 0.0, %v4062_v53 }
  0xb7   : > { %3014 = vmatmul.mubr.msk.bf16.gmra.mxu0 %vm1657_vm9, %v4314_v62  ;;  %3039 = vmatprep.mubr.msk.bf16.mxu1 %vm3417_vm10, %v4753_v6  ;;  %v1501_v58 = vsel %vm1485_vm7, %v4018_v10, %v3334_v14  ;;  %v1500_v37 = vsel %vm1485_vm7, %v1018_v23, %v3333_v55 }
  0xb8   : > { %v3342_v57 = vpop.permute.xlu1 %3341  ;;  %v1499_v25 = vsel %vm1485_vm7, %v4041_v8, %v3329_v42  ;;  %v1498_v27 = vsel %vm1485_vm7, %v1016_v52, %v3328_v59 }
  0xb9   : > { %v3344_v31 = vunpack.i.h.bf16 %v3342_v57  ;;  %v3343_v19 = vunpack.i.l.bf16 %v3342_v57  ;;  %v3337_v47 = vpop.permute.xlu0 %3336 }
  0xba   : > { %v3339_v30 = vunpack.i.h.bf16 %v3337_v47  ;;  %v3338_v18 = vunpack.i.l.bf16 %v3337_v47 }
  0xbb   : > { %v1533_v29 = vsel %vm1518_vm8, %v1500_v37, %v3343_v19  ;;  %v1534_v39 = vsel %vm1518_vm8, %v1501_v58, %v3344_v31  ;;  %v3389_v37 = vld [vmem:[%s4700_s3 + $0x10] sm:$0x3f]  }
  0xbc   : > { %v4349_v4 = vpack.c.bf16 %v1534_v39, %v1533_v29  ;;  %v1531_v45 = vsel %vm1518_vm8, %v1498_v27, %v3338_v18  ;;  %v1532_v51 = vsel %vm1518_vm8, %v1499_v25, %v3339_v30  ;;  %v3352_v10 = vpop.permute.xlu1 %3351 }
  0xbd   : > { %v1557_v15 = vpack.c.bf16 %v1532_v51, %v1531_v45  ;;  %v3347_v8 = vpop.permute.xlu0 %3346  ;;  %v3354_v28 = vunpack.i.h.bf16 %v3352_v10  ;;  %v3353_v35 = vunpack.i.l.bf16 %v3352_v10  ;;  %v2485_v45 = vsel %vm1706_vm1, %v3389_v37, 0 }
  0xbe   : > { %3040 = vmatmul.mubr.msk.bf16.vlgmr.msra.gmra.mxu1 %vm1657_vm9, %v4148_v49  ;;  %v3349_v11 = vunpack.i.h.bf16 %v3347_v8  ;;  %v3348_v44 = vunpack.i.l.bf16 %v3347_v8 }
  0xbf   : > { %3017 = vmatprep.mubr.msk.bf16.mxu0 %vm1657_vm9, %v1557_v15  ;;  %3162 = vmatpush3.bf16.msra.mxu1 %v2424_v38  ;;  %v1505_v48 = vsel %vm1485_vm7, %v4034_v12, %v3354_v28  ;;  %v1504_v41 = vsel %vm1485_vm7, %v1022_v3, %v3353_v35  ;;  %v1578_v12 = vrot.slane %v4052_v33, 7 }
  0xc0   : > { %3018 = vmatmul.mubr.msk.bf16.gmra.mxu0 %vm1657_vm9, %v4349_v4  ;;  %v3362_v63 = vpop.permute.xlu1 %3361  ;;  %3043 = vmatprep.mubr.msk.bf16.mxu1 %vm3417_vm10, %v4753_v6  ;;  %v1503_v53 = vsel %vm1485_vm7, %v4058_v32, %v3349_v11  ;;  %v1502_v14 = vsel %vm1485_vm7, %v1020_v5, %v3348_v44  ;;  %v1579_v32 = vrot.slane %v4054_v7, 7 }
  0xc1   : > { %v3364_v49 = vunpack.i.h.bf16 %v3362_v63  ;;  %v3363_v36 = vunpack.i.l.bf16 %v3362_v63  ;;  %v3357_v24 = vpop.permute.xlu0 %3356  ;;  %3167 = vmatprep.subr.bf16.mxu1 %v4753_v6 }
  0xc2   : > { %v3359_v9 = vunpack.i.h.bf16 %v3357_v24  ;;  %v3358_v61 = vunpack.i.l.bf16 %v3357_v24  ;;  %v1580_v33 = vsel %vm907_vm13, %v1578_v12, %v1579_v32 }
  0xc3   : > { %v1537_v55 = vsel %vm1518_vm8, %v1504_v41, %v3363_v36  ;;  %v1538_v23 = vsel %vm1518_vm8, %v1505_v48, %v3364_v49 }
  0xc4   : > { %v1560_v42 = vpack.c.bf16 %v1538_v23, %v1537_v55  ;;  %v1535_v59 = vsel %vm1518_vm8, %v1502_v14, %v3358_v61  ;;  %v1536_v52 = vsel %vm1518_vm8, %v1503_v53, %v3359_v9 }
  0xc5   : > { %v1559_v57 = vpack.c.bf16 %v1536_v52, %v1535_v59 }
  0xc6   : > { %3044 = vmatmul.mubr.msk.bf16.gmra.mxu1 %vm1657_vm9, %v4171_v46 }
  0xc7   : > { %3021 = vmatprep.mubr.msk.bf16.mxu0 %vm1657_vm9, %v1559_v57  ;;  %3047 = vmatprep.mubr.msk.bf16.mxu1 %vm3417_vm10, %v4753_v6 }
  0xc8   : > { %3022 = vmatmul.mubr.msk.bf16.gmra.mxu0 %vm1657_vm9, %v1560_v42 }
  0xc9   : > { %3101 = vmatprep.mubr.msk.bf16.mxu0 %vm3417_vm10, %v4753_v6 }
  0xce   : > { %3048 = vmatmul.mubr.msk.bf16.gmra.mxu1 %vm1657_vm9, %v4222_v13 }
  0xcf   : > { %3051 = vmatprep.mubr.msk.bf16.mxu1 %vm3417_vm10, %v4753_v6 }
  0xd0   : > { %3102 = vmatmul.mubr.msk.bf16.vlgmr.msra.gmra.mxu0 %vm1657_vm9, %v4171_v46  ;;  %v1581_v46 = vsel %vm907_vm13, %v1579_v32, %v1578_v12 }
  0xd1   : > { %3105 = vmatprep.mubr.msk.bf16.mxu0 %vm3417_vm10, %v4753_v6  ;;  %v1582_v7 = vsel %vm4111_vm6, 0.0, %v1581_v46 }
  0xd6   : > { %3052 = vmatmul.mubr.msk.bf16.gmra.mxu1 %vm1657_vm9, %v4241_v60 }
  0xd7   : > { %3055 = vmatprep.mubr.msk.bf16.mxu1 %vm3417_vm10, %v4753_v6 }
  0xd8   : > { %3106 = vmatmul.mubr.msk.bf16.gmra.mxu0 %vm1657_vm9, %v4222_v13 }
  0xd9   : > { %3109 = vmatprep.mubr.msk.bf16.mxu0 %vm3417_vm10, %v4753_v6 }
  0xde   : > { %3056 = vmatmul.mubr.msk.bf16.gmra.mxu1 %vm1657_vm9, %v4292_v0 }
  0xdf   : > { %3059 = vmatprep.mubr.msk.bf16.mxu1 %vm3417_vm10, %v4753_v6 }
  0xe0   : > { %3110 = vmatmul.mubr.msk.bf16.gmra.mxu0 %vm1657_vm9, %v4241_v60  ;;  %v3372_v60 = vpop.permute.xlu1 %3371 }
  0xe1   : > { %3113 = vmatprep.mubr.msk.bf16.mxu0 %vm3417_vm10, %v4753_v6  ;;  %v3374_v40 = vunpack.i.h.bf16 %v3372_v60  ;;  %v3373_v31 = vunpack.i.l.bf16 %v3372_v60 }
  0xe4   : > { %v3382_v30 = vpop.permute.xlu1 %3381 }
  0xe5   : > { %v3384_v29 = vunpack.i.h.bf16 %v3382_v30  ;;  %v3383_v39 = vunpack.i.l.bf16 %v3382_v30 }
  0xe6   : > { %3060 = vmatmul.mubr.msk.bf16.gmra.mxu1 %vm1657_vm9, %v4314_v62 }
  0xe7   : > { %3063 = vmatprep.mubr.msk.bf16.mxu1 %vm3417_vm10, %v4753_v6 }
  0xe8   : > { %3114 = vmatmul.mubr.msk.bf16.gmra.mxu0 %vm1657_vm9, %v4292_v0  ;;  %v1616_v0 = vrot.slane %v4064_v34, 7 }
  0xe9   : > { %3117 = vmatprep.mubr.msk.bf16.mxu0 %vm3417_vm10, %v4753_v6 }
  0xee   : > { %3064 = vmatmul.mubr.msk.bf16.gmra.mxu1 %vm1657_vm9, %v1557_v15 }
  0xef   : > { %3067 = vmatprep.mubr.msk.bf16.mxu1 %vm3417_vm10, %v4753_v6 }
  0xf0   : > { %3118 = vmatmul.mubr.msk.bf16.gmra.mxu0 %vm1657_vm9, %v4314_v62  ;;  %v1617_v62 = vrot.slane %v4070_v56, 7 }
  0xf1   : > { %3121 = vmatprep.mubr.msk.bf16.mxu0 %vm3417_vm10, %v4753_v6 }
  0xf2   : > { %v1619_v50 = vsel %vm907_vm13, %v1617_v62, %v1616_v0  ;;  %v1618_v18 = vsel %vm907_vm13, %v1616_v0, %v1617_v62 }
  0xf3   : > { %v1620_v25 = vsel %vm4111_vm6, 0.0, %v1619_v50 }
  0xf6   : > { %3068 = vmatmul.mubr.msk.bf16.gmra.mxu1 %vm1657_vm9, %v4349_v4 }
  0xf7   : > { %3071 = vmatprep.mubr.msk.bf16.mxu1 %vm3417_vm10, %v4753_v6 }
  0xf8   : > { %3122 = vmatmul.mubr.msk.bf16.gmra.mxu0 %vm1657_vm9, %v1557_v15 }
  0xf9   : > { %3125 = vmatprep.mubr.msk.bf16.mxu0 %vm3417_vm10, %v4753_v6 }
  0xfe   : > { %3072 = vmatmul.mubr.msk.bf16.gmra.mxu1 %vm1657_vm9, %v1559_v57 }
  0xff   : > { %3075 = vmatprep.mubr.msk.bf16.mxu1 %vm3417_vm10, %v4753_v6 }
 0x100   : > { %3126 = vmatmul.mubr.msk.bf16.gmra.mxu0 %vm1657_vm9, %v4349_v4 }
 0x101   : > { %3129 = vmatprep.mubr.msk.bf16.mxu0 %vm3417_vm10, %v4753_v6 }
 0x106   : > { %3076 = vmatmul.mubr.msk.bf16.gmra.mxu1 %vm1657_vm9, %v1560_v42 }
 0x107   : > { %3079 = vmatprep.mubr.msk.bf16.mxu1 %vm3417_vm10, %v4753_v6 }
 0x108   : > { %3130 = vmatmul.mubr.msk.bf16.gmra.mxu0 %vm1657_vm9, %v1559_v57 }
 0x109   : > { %3133 = vmatprep.mubr.msk.bf16.mxu0 %vm3417_vm10, %v4753_v6 }
 0x10e   : > { %3080 = vmatmul.mubr.msk.bf16.gmra.mxu1 %vm1657_vm9, %v4143_v21 }
 0x10f   : > { %3083 = vmatprep.mubr.msk.bf16.mxu1 %vm3417_vm10, %v4753_v6 }
 0x110   : > { %3134 = vmatmul.mubr.msk.bf16.gmra.mxu0 %vm1657_vm9, %v1560_v42 }
 0x111   : > { %3137 = vmatprep.mubr.msk.bf16.mxu0 %vm3417_vm10, %v4753_v6 }
 0x116   : > { %3084 = vmatmul.mubr.msk.bf16.gmra.mxu1 %vm1657_vm9, %v4166_v22 }
 0x117   : > { %3087 = vmatprep.mubr.msk.bf16.mxu1 %vm3417_vm10, %v4753_v6 }
 0x118   : > { %3138 = vmatmul.mubr.msk.bf16.gmra.mxu0 %vm1657_vm9, %v4143_v21  ;;  %v3367_v21 = vpop.permute.xlu0 %3366 }
 0x119   : > { %3141 = vmatprep.mubr.msk.bf16.mxu0 %vm3417_vm10, %v4753_v6  ;;  %v3368_v13 = vunpack.i.l.bf16 %v3367_v21 }
 0x11b   : > { %v1606_v19 = vsel %vm1485_vm7, %v1582_v7, %v3368_v13 }
 0x11c   : > { %v3377_v47 = vpop.permute.xlu0 %3376  ;;  %v1608_v2 = vsel %vm1518_vm8, %v1606_v19, %v3373_v31 }
 0x11d   : > { %v3379_v34 = vunpack.i.h.bf16 %v3377_v47  ;;  %v3378_v56 = vunpack.i.l.bf16 %v3377_v47 }
 0x11e   : > { %3088 = vmatmul.mubr.msk.bf16.gmra.mxu1 %vm1657_vm9, %v4217_v54 }
 0x11f   : > { %3091 = vmatprep.mubr.msk.bf16.mxu1 %vm3417_vm10, %v4753_v6  ;;  %v1644_v4 = vsel %vm1485_vm7, %v1620_v25, %v3378_v56 }
 0x120   : > { %3142 = vmatmul.mubr.msk.bf16.gmra.mxu0 %vm1657_vm9, %v4166_v22  ;;  %v3369_v22 = vunpack.i.h.bf16 %v3367_v21  ;;  %v1646_v51 = vsel %vm1518_vm8, %v1644_v4, %v3383_v39 }
 0x121   : > { %3145 = vmatprep.mubr.msk.bf16.mxu0 %vm3417_vm10, %v4753_v6 }
 0x126   : > { %3092 = vmatmul.mubr.msk.bf16.gmra.mxu1 %vm1657_vm9, %v4237_v16 }
 0x127   : > { %3095 = vmatprep.mubr.msk.bf16.mxu1 %vm3417_vm10, %v4753_v6 }
 0x128   : > { %3146 = vmatmul.mubr.msk.bf16.gmra.mxu0 %vm1657_vm9, %v4217_v54  ;;  %v1607_v54 = vsel %vm1485_vm7, %v1580_v33, %v3369_v22 }
 0x129   : > { %3149 = vmatprep.mubr.msk.bf16.mxu0 %vm3417_vm10, %v4753_v6  ;;  %v1609_v58 = vsel %vm1518_vm8, %v1607_v54, %v3374_v40 }
 0x12a   : > { %v1610_v27 = vpack.c.bf16 %v1609_v58, %v1608_v2 }
 0x12e   : > { %3096 = vmatmul.mubr.msk.bf16.gmra.mxu1 %vm1657_vm9, %v4288_v26 }
 0x12f   : > { %3163 = vmatprep.mubr.msk.bf16.mxu1 %vm3417_vm10, %v4753_v6 }
 0x130   : > { %3150 = vmatmul.mubr.msk.bf16.gmra.mxu0 %vm1657_vm9, %v4237_v16  ;;  %v1645_v16 = vsel %vm1485_vm7, %v1618_v18, %v3379_v34  ;;  %v4585_v18 = vld [vmem:[%s4701_s4] ss:$0 sm:$0xff] }
 0x131   : > { %3153 = vmatprep.mubr.msk.bf16.mxu0 %vm3417_vm10, %v4753_v6  ;;  %v1647_v1 = vsel %vm1518_vm8, %v1645_v16, %v3384_v29 }
 0x132   : > { %v1648_v43 = vpack.c.bf16 %v1647_v1, %v1646_v51 }
 0x136   : > { %3164 = vmatmul.mubr.msk.bf16.vlgmr.msra.gmra.mxu1 %vm1657_vm9, %v1610_v27 }
 0x137   : > { %3168 = vmatpush3.bf16.msra.mxu1 %v2485_v45  ;;  %3169 = vmatprep.mubr.msk.bf16.mxu1 %vm3417_vm10, %v4753_v6 }
 0x138   : > { %3154 = vmatmul.mubr.msk.bf16.gmra.mxu0 %vm1657_vm9, %v4288_v26 }
 0x139   : > { %3157 = vmatprep.mubr.msk.bf16.mxu0 %vm3417_vm10, %v4753_v6 }
 0x13e   : > { %3170 = vmatmul.mubr.msk.bf16.vlgmr.msra.gmra.mxu1 %vm1657_vm9, %v1648_v43 }
 0x140   : > { %3158 = vmatmul.mubr.msk.bf16.gmra.mxu0 %vm1657_vm9, %v4310_v17 }
 0x156   : > { %v4526_v10 = vpop.f32.mrf.mxu1 }
 0x157   : > { %v3007_v38 = vpop.f32.mrf.mxu0 }
 0x158   : > { %v4528_v15 = vpop.f32.mrf.mxu1 }
 0x159   : > { %v1744_v20 = vpop.f32.mrf.mxu0 }
 0x15a   : > { %v4530_v8 = vpop.f32.mrf.mxu1 }
 0x15b   : > { %v3008_v28 = vpop.f32.mrf.mxu0 }
 0x15c   : > { %v4532_v35 = vpop.f32.mrf.mxu1 }
 0x15d   : > { %v1747_v26 = vpop.f32.mrf.mxu0 }
 0x166   : > { %v4534_v3 = vpop.f32.mrf.mxu1 }
 0x167   : > { %v4536_v6 = vpop.f32.mrf.mxu0 }
 0x168   : > { %v4538_v11 = vpop.f32.mrf.mxu1 }
 0x169   : > { %v1760_v44 = vpop.f32.mrf.mxu0 }
 0x16a   : > { %v4540_v17 = vpop.f32.mrf.mxu1 }
 0x16b   : > { %v4542_v5 = vpop.f32.mrf.mxu0 }
 0x16c   : > { %v4544_v63 = vpop.f32.mrf.mxu1 }
 0x16d   : > { %v1763_v49 = vpop.f32.mrf.mxu0 }
 0x176   : > { %v4546_v36 = vpop.f32.mrf.mxu1 }
 0x177   : > { %v4548_v24 = vpop.f32.mrf.mxu0 }
 0x178   : > { %v4550_v48 = vpop.f32.mrf.mxu1 }
 0x179   : > { %v4552_v41 = vpop.f32.mrf.mxu0 }
 0x17a   : > { %v4554_v9 = vpop.f32.mrf.mxu1 }
 0x17b   : > { %v4556_v61 = vpop.f32.mrf.mxu0 }
 0x17c   : > { %v4558_v53 = vpop.f32.mrf.mxu1 }
 0x17d   : > { %v4560_v14 = vpop.f32.mrf.mxu0 }
 0x17e   : > { %v1947_v55 = vpop.f32.mrf.mxu1 }
 0x17f   : > { %v2097_v37 = vadd.f32 %v3007_v38, %v1947_v55 }
 0x180   : > { %v4562_v23 = vpop.f32.mrf.mxu0  ;;  %v3041_v42 = vpop.f32.mrf.mxu1 }
 0x182   : > { %v4564_v59 = vpop.f32.mrf.mxu0  ;;  %v1950_v52 = vpop.f32.mrf.mxu1 }
 0x183   : > { %v2098_v16 = vadd.f32 %v3008_v28, %v1950_v52 }
 0x184   : > { %v4566_v57 = vpop.f32.mrf.mxu0  ;;  %v3042_v12 = vpop.f32.mrf.mxu1 }
 0x186   : > { %v4568_v32 = vpop.f32.mrf.mxu0  ;;  %v1955_v21 = vpop.f32.mrf.mxu1 }
 0x188   : > { %v4570_v46 = vpop.f32.mrf.mxu0  ;;  %v3045_v22 = vpop.f32.mrf.mxu1 }
 0x18a   : > { %v4572_v13 = vpop.f32.mrf.mxu0  ;;  %v1958_v60 = vpop.f32.mrf.mxu1 }
 0x18c   : > { %v4574_v33 = vpop.f32.mrf.mxu0  ;;  %v3046_v7 = vpop.f32.mrf.mxu1 }
 0x18e   : > { %v4576_v0 = vpop.f32.mrf.mxu0  ;;  %v1963_v62 = vpop.f32.mrf.mxu1 }
 0x190   : > { %v2202_v40 = vpop.f32.mrf.mxu0  ;;  %v3049_v31 = vpop.f32.mrf.mxu1 }
 0x191   : > { %v4578_v54 = vadd.f32 %v2202_v40, %v1744_v20  ;;  %v2100_v40 = vadd.f32 %v1958_v60, %v1763_v49 }
 0x192   : > { %v3103_v19 = vpop.f32.mrf.mxu0  ;;  %v1966_v47 = vpop.f32.mrf.mxu1 }
 0x194   : > { %v2205_v50 = vpop.f32.mrf.mxu0  ;;  %v3050_v2 = vpop.f32.mrf.mxu1 }
 0x195   : > { %v4580_v58 = vadd.f32 %v2205_v50, %v1747_v26  ;;  %v2099_v26 = vadd.f32 %v1955_v21, %v1760_v44 }
 0x196   : > { %v3104_v34 = vpop.f32.mrf.mxu0  ;;  %v1971_v56 = vpop.f32.mrf.mxu1 }
 0x198   : > { %v2210_v30 = vpop.f32.mrf.mxu0  ;;  %v3053_v25 = vpop.f32.mrf.mxu1 }
 0x199   : > { %v2353_v27 = vadd.f32 %v2210_v30, %v2097_v37  ;;  %v2101_v37 = vadd.f32 %v4536_v6, %v1963_v62 }
 0x19a   : > { %v3107_v29 = vpop.f32.mrf.mxu0  ;;  %v1974_v39 = vpop.f32.mrf.mxu1 }
 0x19b   : > { %v2573_v4 = vadd.f32 %v4585_v18, %v2353_v27 }
 0x19c   : > { %v2213_v45 = vpop.f32.mrf.mxu0  ;;  %v3054_v51 = vpop.f32.mrf.mxu1 }
 0x19d   : > { %v2605_v1 = vmax.f32 %v2573_v4, 0.0  ;;  %v2354_v43 = vadd.f32 %v2213_v45, %v2098_v16  ;;  %v2102_v4 = vadd.f32 %v4542_v5, %v1966_v47 }
 0x19e   : > { %v3108_v38 = vpop.f32.mrf.mxu0  ;;  %v1979_v20 = vpop.f32.mrf.mxu1 }
 0x19f   : > { %2637 = vst [vmem:[%s4592_s28 + $0x10] sm:$0xff] %v2605_v1  ;;  %v2574_v55 = vadd.f32 %v4585_v18, %v2354_v43 }
 0x1a0   : > { %v2218_v28 = vpop.f32.mrf.mxu0  ;;  %v3057_v42 = vpop.f32.mrf.mxu1 }
 0x1a1   : > { %v2606_v52 = vmax.f32 %v2574_v55, 0.0  ;;  %v2355_v12 = vadd.f32 %v2218_v28, %v2099_v26  ;;  %v2103_v26 = vadd.f32 %v1971_v56, %v4552_v41 }
 0x1a2   : > { %v3111_v22 = vpop.f32.mrf.mxu0  ;;  %v1982_v7 = vpop.f32.mrf.mxu1 }
 0x1a3   : > { %2638 = vst [vmem:[%s4592_s28 + $0x18] sm:$0xff] %v2606_v52  ;;  %v2575_v31 = vadd.f32 %v4585_v18, %v2355_v12  ;;  %v2104_v22 = vadd.f32 %v1974_v39, %v4560_v14 }
 0x1a4   : > { %v2221_v19 = vpop.f32.mrf.mxu0  ;;  %v3058_v50 = vpop.f32.mrf.mxu1 }
 0x1a5   : > { %v2607_v2 = vmax.f32 %v2575_v31, 0.0  ;;  %v2356_v34 = vadd.f32 %v2221_v19, %v2100_v40 }
 0x1a6   : > { %v3112_v44 = vpop.f32.mrf.mxu0  ;;  %v1987_v21 = vpop.f32.mrf.mxu1 }
 0x1a7   : > { %2639 = vst [vmem:[%s4592_s28 + $0x20] sm:$0xff] %v2607_v2  ;;  %v2576_v30 = vadd.f32 %v4585_v18, %v2356_v34  ;;  %v2105_v34 = vadd.f32 %v4548_v24, %v1979_v20 }
 0x1a8   : > { %v2226_v25 = vpop.f32.mrf.mxu0  ;;  %v3061_v27 = vpop.f32.mrf.mxu1 }
 0x1a9   : > { %v2608_v29 = vmax.f32 %v2576_v30, 0.0  ;;  %v2357_v49 = vadd.f32 %v2226_v25, %v2101_v37 }
 0x1aa   : > { %v3115_v60 = vpop.f32.mrf.mxu0  ;;  %v1990_v16 = vpop.f32.mrf.mxu1 }
 0x1ab   : > { %2640 = vst [vmem:[%s4592_s28 + $0x28] sm:$0xff] %v2608_v29  ;;  %v2577_v45 = vadd.f32 %v4585_v18, %v2357_v49  ;;  %v2106_v29 = vadd.f32 %v4556_v61, %v1982_v7 }
 0x1ac   : > { %v2229_v51 = vpop.f32.mrf.mxu0  ;;  %v3062_v1 = vpop.f32.mrf.mxu1 }
 0x1ad   : > { %v2609_v43 = vmax.f32 %v2577_v45, 0.0  ;;  %v2358_v6 = vadd.f32 %v2229_v51, %v2102_v4  ;;  %v2107_v1 = vadd.f32 %v1987_v21, %v4564_v59 }
 0x1ae   : > { %v3116_v62 = vpop.f32.mrf.mxu0  ;;  %v1995_v38 = vpop.f32.mrf.mxu1 }
 0x1af   : > { %2641 = vst [vmem:[%s4592_s28 + $0x30] sm:$0xff] %v2609_v43  ;;  %v2578_v55 = vadd.f32 %v4585_v18, %v2358_v6 }
 0x1b0   : > { %v2234_v28 = vpop.f32.mrf.mxu0  ;;  %v3065_v42 = vpop.f32.mrf.mxu1 }
 0x1b1   : > { %v2610_v52 = vmax.f32 %v2578_v55, 0.0  ;;  %v2359_v5 = vadd.f32 %v2234_v28, %v2103_v26  ;;  %v2108_v28 = vadd.f32 %v1990_v16, %v4568_v32 }
 0x1b2   : > { %v3119_v47 = vpop.f32.mrf.mxu0  ;;  %v1998_v12 = vpop.f32.mrf.mxu1 }
 0x1b3   : > { %2642 = vst [vmem:[%s4592_s28 + $0x38] sm:$0xff] %v2610_v52  ;;  %v2579_v40 = vadd.f32 %v4585_v18, %v2359_v5 }
 0x1b4   : > { %v2237_v31 = vpop.f32.mrf.mxu0  ;;  %v3066_v19 = vpop.f32.mrf.mxu1 }
 0x1b5   : > { %v2611_v50 = vmax.f32 %v2579_v40, 0.0  ;;  %v2360_v41 = vadd.f32 %v2237_v31, %v2104_v22  ;;  %v2109_v40 = vadd.f32 %v4562_v23, %v1995_v38 }
 0x1b6   : > { %v3120_v56 = vpop.f32.mrf.mxu0  ;;  %v2003_v2 = vpop.f32.mrf.mxu1 }
 0x1b7   : > { %2643 = vst [vmem:[%s4592_s28 + $0x40] sm:$0xff] %v2611_v50  ;;  %v2580_v44 = vadd.f32 %v4585_v18, %v2360_v41 }
 0x1b8   : > { %v2242_v37 = vpop.f32.mrf.mxu0  ;;  %v3069_v30 = vpop.f32.mrf.mxu1 }
 0x1b9   : > { %v2612_v25 = vmax.f32 %v2580_v44, 0.0  ;;  %v2361_v14 = vadd.f32 %v2242_v37, %v2105_v34  ;;  %v2110_v34 = vadd.f32 %v4566_v57, %v1998_v12 }
 0x1ba   : > { %v3123_v39 = vpop.f32.mrf.mxu0  ;;  %v2006_v27 = vpop.f32.mrf.mxu1 }
 0x1bb   : > { %2644 = vst [vmem:[%s4592_s28 + $0x48] sm:$0xff] %v2612_v25  ;;  %v2581_v49 = vadd.f32 %v4585_v18, %v2361_v14  ;;  %v2111_v39 = vadd.f32 %v2003_v2, %v4572_v13 }
 0x1bc   : > { %v2245_v60 = vpop.f32.mrf.mxu0  ;;  %v3070_v4 = vpop.f32.mrf.mxu1 }
 0x1bd   : > { %v2613_v45 = vmax.f32 %v2581_v49, 0.0  ;;  %v2362_v24 = vadd.f32 %v2245_v60, %v2106_v29 }
 0x1be   : > { %v3124_v20 = vpop.f32.mrf.mxu0  ;;  %v2011_v51 = vpop.f32.mrf.mxu1 }
 0x1bf   : > { %2645 = vst [vmem:[%s4592_s28 + $0x50] sm:$0xff] %v2613_v45  ;;  %v2582_v43 = vadd.f32 %v4585_v18, %v2362_v24  ;;  %v2112_v24 = vadd.f32 %v2006_v27, %v4576_v0 }
 0x1c0   : > { %v2250_v6 = vpop.f32.mrf.mxu0  ;;  %v3073_v62 = vpop.f32.mrf.mxu1 }
 0x1c1   : > { %v2614_v26 = vmax.f32 %v2582_v43, 0.0  ;;  %v2363_v61 = vadd.f32 %v2250_v6, %v2107_v1 }
 0x1c2   : > { %v3127_v7 = vpop.f32.mrf.mxu0  ;;  %v2014_v55 = vpop.f32.mrf.mxu1 }
 0x1c3   : > { %2646 = vst [vmem:[%s4592_s28 + $0x58] sm:$0xff] %v2614_v26  ;;  %v2583_v42 = vadd.f32 %v4585_v18, %v2363_v61  ;;  %v2113_v26 = vadd.f32 %v4570_v46, %v2011_v51 }
 0x1c4   : > { %v2253_v52 = vpop.f32.mrf.mxu0  ;;  %v3074_v5 = vpop.f32.mrf.mxu1 }
 0x1c5   : > { %v2615_v47 = vmax.f32 %v2583_v42, 0.0  ;;  %v2364_v59 = vadd.f32 %v2253_v52, %v2108_v28  ;;  %v2114_v5 = vadd.f32 %v4574_v33, %v2014_v55 }
 0x1c6   : > { %v3128_v21 = vpop.f32.mrf.mxu0  ;;  %v2019_v22 = vpop.f32.mrf.mxu1 }
 0x1c7   : > { %2647 = vst [vmem:[%s4592_s28 + $0x60] sm:$0xff] %v2615_v47  ;;  %v2584_v31 = vadd.f32 %v4585_v18, %v2364_v59 }
 0x1c8   : > { %v2258_v19 = vpop.f32.mrf.mxu0  ;;  %v3077_v50 = vpop.f32.mrf.mxu1 }
 0x1c9   : > { %v2616_v41 = vmax.f32 %v2584_v31, 0.0  ;;  %v2365_v32 = vadd.f32 %v2258_v19, %v2109_v40  ;;  %v2115_v19 = vadd.f32 %v2019_v22, %v4528_v15 }
 0x1ca   : > { %v3131_v16 = vpop.f32.mrf.mxu0  ;;  %v2022_v56 = vpop.f32.mrf.mxu1 }
 0x1cb   : > { %2648 = vst [vmem:[%s4592_s28 + $0x68] sm:$0xff] %v2616_v41  ;;  %v2585_v44 = vadd.f32 %v4585_v18, %v2365_v32 }
 0x1cc   : > { %v2261_v37 = vpop.f32.mrf.mxu0  ;;  %v3078_v30 = vpop.f32.mrf.mxu1 }
 0x1cd   : > { %v2617_v25 = vmax.f32 %v2585_v44, 0.0  ;;  %v2366_v23 = vadd.f32 %v2261_v37, %v2110_v34  ;;  %v2116_v44 = vadd.f32 %v2022_v56, %v4532_v35 }
 0x1ce   : > { %v3132_v38 = vpop.f32.mrf.mxu0  ;;  %v2027_v14 = vpop.f32.mrf.mxu1 }
 0x1cf   : > { %2649 = vst [vmem:[%s4592_s28 + $0x70] sm:$0xff] %v2617_v25  ;;  %v2586_v29 = vadd.f32 %v4585_v18, %v2366_v23 }
 0x1d0   : > { %v2266_v49 = vpop.f32.mrf.mxu0  ;;  %v3081_v60 = vpop.f32.mrf.mxu1 }
 0x1d1   : > { %v2618_v4 = vmax.f32 %v2586_v29, 0.0  ;;  %v2367_v57 = vadd.f32 %v2266_v49, %v2111_v39  ;;  %v2117_v39 = vadd.f32 %v4526_v10, %v2027_v14 }
 0x1d2   : > { %v3135_v12 = vpop.f32.mrf.mxu0  ;;  %v2030_v45 = vpop.f32.mrf.mxu1 }
 0x1d3   : > { %2650 = vst [vmem:[%s4592_s28 + $0x78] sm:$0xff] %v2618_v4  ;;  %v2587_v20 = vadd.f32 %v4585_v18, %v2367_v57  ;;  %v2118_v12 = vadd.f32 %v4530_v8, %v2030_v45 }
 0x1d4   : > { %v2269_v1 = vpop.f32.mrf.mxu0  ;;  %v3082_v43 = vpop.f32.mrf.mxu1 }
 0x1d5   : > { %v2619_v6 = vmax.f32 %v2587_v20, 0.0  ;;  %v2368_v13 = vadd.f32 %v2269_v1, %v2112_v24 }
 0x1d6   : > { %v3136_v2 = vpop.f32.mrf.mxu0  ;;  %v2035_v62 = vpop.f32.mrf.mxu1 }
 0x1d7   : > { %2651 = vst [vmem:[%s4592_s28 + $0x80] sm:$0xff] %v2619_v6  ;;  %v2588_v61 = vadd.f32 %v4585_v18, %v2368_v13  ;;  %v2119_v13 = vadd.f32 %v2035_v62, %v4538_v11 }
 0x1d8   : > { %v2274_v7 = vpop.f32.mrf.mxu0  ;;  %v3085_v28 = vpop.f32.mrf.mxu1 }
 0x1d9   : > { %v2620_v42 = vmax.f32 %v2588_v61, 0.0  ;;  %v2369_v0 = vadd.f32 %v2274_v7, %v2113_v26 }
 0x1da   : > { %v3139_v27 = vpop.f32.mrf.mxu0  ;;  %v2038_v52 = vpop.f32.mrf.mxu1 }
 0x1db   : > { %2652 = vst [vmem:[%s4592_s28 + $0x88] sm:$0xff] %v2620_v42  ;;  %v2589_v47 = vadd.f32 %v4585_v18, %v2369_v0  ;;  %v2120_v42 = vadd.f32 %v2038_v52, %v4544_v63 }
 0x1dc   : > { %v2277_v59 = vpop.f32.mrf.mxu0  ;;  %v3086_v21 = vpop.f32.mrf.mxu1 }
 0x1dd   : > { %v2621_v40 = vmax.f32 %v2589_v47, 0.0  ;;  %v2370_v46 = vadd.f32 %v2277_v59, %v2114_v5 }
 0x1de   : > { %v3140_v51 = vpop.f32.mrf.mxu0  ;;  %v2043_v31 = vpop.f32.mrf.mxu1 }
 0x1df   : > { %2653 = vst [vmem:[%s4592_s28 + $0x90] sm:$0xff] %v2621_v40  ;;  %v2590_v50 = vadd.f32 %v4585_v18, %v2370_v46  ;;  %v2121_v21 = vadd.f32 %v4534_v3, %v2043_v31 }
 0x1e0   : > { %v2282_v41 = vpop.f32.mrf.mxu0  ;;  %v3089_v32 = vpop.f32.mrf.mxu1 }
 0x1e1   : > { %v2622_v16 = vmax.f32 %v2590_v50, 0.0  ;;  %v2371_v33 = vadd.f32 %v2282_v41, %v2115_v19 }
 0x1e2   : > { %v3143_v55 = vpop.f32.mrf.mxu0  ;;  %v2046_v34 = vpop.f32.mrf.mxu1 }
 0x1e3   : > { %2654 = vst [vmem:[%s4592_s28 + $0x98] sm:$0xff] %v2622_v16  ;;  %v2591_v37 = vadd.f32 %v4585_v18, %v2371_v33  ;;  %v2122_v16 = vadd.f32 %v4540_v17, %v2046_v34 }
 0x1e4   : > { %v2285_v30 = vpop.f32.mrf.mxu0  ;;  %v3090_v25 = vpop.f32.mrf.mxu1 }
 0x1e5   : > { %v2623_v23 = vmax.f32 %v2591_v37, 0.0  ;;  %v2372_v15 = vadd.f32 %v2285_v30, %v2116_v44 }
 0x1e6   : > { %v3144_v22 = vpop.f32.mrf.mxu0  ;;  %v2051_v38 = vpop.f32.mrf.mxu1 }
 0x1e7   : > { %2655 = vst [vmem:[%s4592_s28 + $0xa0] sm:$0xff] %v2623_v23  ;;  %v2592_v29 = vadd.f32 %v4585_v18, %v2372_v15  ;;  %v2123_v17 = vadd.f32 %v2051_v38, %v4550_v48 }
 0x1e8   : > { %v2290_v49 = vpop.f32.mrf.mxu0  ;;  %v3093_v60 = vpop.f32.mrf.mxu1 }
 0x1e9   : > { %v2624_v4 = vmax.f32 %v2592_v29, 0.0  ;;  %v2373_v35 = vadd.f32 %v2290_v49, %v2117_v39 }
 0x1ea   : > { %v3147_v56 = vpop.f32.mrf.mxu0  ;;  %v4649_v57 = vpop.f32.mrf.mxu1 }
 0x1eb   : > { %2656 = vst [vmem:[%s4592_s28 + $0xa8] sm:$0xff] %v2624_v4  ;;  %v2593_v24 = vadd.f32 %v4585_v18, %v2373_v35  ;;  %v2124_v48 = vadd.f32 %v4649_v57, %v4558_v53 }
 0x1ec   : > { %v2293_v20 = vpop.f32.mrf.mxu0  ;;  %v3094_v1 = vpop.f32.mrf.mxu1 }
 0x1ed   : > { %v2625_v10 = vmax.f32 %v2593_v24, 0.0  ;;  %v2374_v14 = vadd.f32 %v2293_v20, %v2118_v12 }
 0x1ee   : > { %v3148_v43 = vpop.f32.mrf.mxu0  ;;  %v2059_v6 = vpop.f32.mrf.mxu1 }
 0x1ef   : > { %2657 = vst [vmem:[%s4592_s28 + $0xb0] sm:$0xff] %v2625_v10  ;;  %v2594_v2 = vadd.f32 %v4585_v18, %v2374_v14  ;;  %v2125_v44 = vadd.f32 %v4546_v36, %v2059_v6 }
 0x1f0   : > { %v2298_v26 = vpop.f32.mrf.mxu0  ;;  %v3097_v61 = vpop.f32.mrf.mxu1 }
 0x1f1   : > { %v2626_v7 = vmax.f32 %v2594_v2, 0.0  ;;  %v2375_v8 = vadd.f32 %v2298_v26, %v2119_v13 }
 0x1f2   : > { %v3151_v45 = vpop.f32.mrf.mxu0  ;;  %v2062_v28 = vpop.f32.mrf.mxu1 }
 0x1f3   : > { %2658 = vst [vmem:[%s4592_s28 + $0xb8] sm:$0xff] %v2626_v7  ;;  %v2595_v0 = vadd.f32 %v4585_v18, %v2375_v8  ;;  %v2126_v36 = vadd.f32 %v4554_v9, %v2062_v28 }
 0x1f4   : > { %v2301_v27 = vpop.f32.mrf.mxu0  ;;  %v3098_v5 = vpop.f32.mrf.mxu1 }
 0x1f5   : > { %v2627_v47 = vmax.f32 %v2595_v0, 0.0  ;;  %v2376_v11 = vadd.f32 %v2301_v27, %v2120_v42 }
 0x1f6   : > { %v3152_v62 = vpop.f32.mrf.mxu0  ;;  %v2460_v59 = vpop.f32.mrf.mxu1 }
 0x1f7   : > { %2659 = vst [vmem:[%s4592_s28 + $0xc0] sm:$0xff] %v2627_v47  ;;  %v2596_v40 = vadd.f32 %v4585_v18, %v2376_v11  ;;  %v2467_v46 = vadd.f32 %v2460_v59, %v4578_v54 }
 0x1f8   : > { %v2306_v51 = vpop.f32.mrf.mxu0  ;;  %v3165_v63 = vpop.f32.mrf.mxu1 }
 0x1f9   : > { %v2628_v52 = vmax.f32 %v2596_v40, 0.0  ;;  %v2571_v19 = vadd.f32 %v4585_v18, %v2467_v46  ;;  %v2377_v50 = vadd.f32 %v2306_v51, %v2121_v21 }
 0x1fa   : > { %v3155_v41 = vpop.f32.mrf.mxu0  ;;  %v2463_v32 = vpop.f32.mrf.mxu1 }
 0x1fb   : > { %2660 = vst [vmem:[%s4592_s28 + $0xc8] sm:$0xff] %v2628_v52  ;;  %v2603_v33 = vmax.f32 %v2571_v19, 0.0  ;;  %v2597_v3 = vadd.f32 %v4585_v18, %v2377_v50  ;;  %v2468_v31 = vadd.f32 %v2463_v32, %v4580_v58 }
 0x1fc   : > { %v2309_v55 = vpop.f32.mrf.mxu0  ;;  %v3166_v54 = vpop.f32.mrf.mxu1 }
 0x1fd   : > { %2635 = vst [vmem:[%s4592_s28] sm:$0xff] %v2603_v33  ;;  %v2629_v37 = vmax.f32 %v2597_v3, 0.0  ;;  %v2572_v30 = vadd.f32 %v4585_v18, %v2468_v31  ;;  %v2378_v25 = vadd.f32 %v2309_v55, %v2122_v16 }
 0x1fe   : > { %v3156_v23 = vpop.f32.mrf.mxu0  ;;  %v2521_v15 = vpop.f32.mrf.mxu1 }
 0x1ff   : > { %2661 = vst [vmem:[%s4592_s28 + $0xd0] sm:$0xff] %v2629_v37  ;;  %v2604_v34 = vmax.f32 %v2572_v30, 0.0  ;;  %v2598_v22 = vadd.f32 %v4585_v18, %v2378_v25  ;;  %v2528_v58 = vadd.f32 %v2521_v15, %v2125_v44 }
 0x200   : > { %v2314_v39 = vpop.f32.mrf.mxu0  ;;  %v3171_v29 = vpop.f32.mrf.mxu1 }
 0x201   : > { %2636 = vst [vmem:[%s4592_s28 + $0x8] sm:$0xff] %v2604_v34  ;;  %v2630_v49 = vmax.f32 %v2598_v22, 0.0  ;;  %v2601_v60 = vadd.f32 %v4585_v18, %v2528_v58  ;;  %v2379_v4 = vadd.f32 %v2314_v39, %v2123_v17 }
 0x202   : > { %v3159_v35 = vpop.f32.mrf.mxu0  ;;  %v2524_v56 = vpop.f32.mrf.mxu1 }
 0x203   : > { %2662 = vst [vmem:[%s4592_s28 + $0xd8] sm:$0xff] %v2630_v49  ;;  %v2633_v38 = vmax.f32 %v2601_v60, 0.0  ;;  %v2599_v12 = vadd.f32 %v4585_v18, %v2379_v4  ;;  %v2529_v24 = vadd.f32 %v2524_v56, %v2126_v36 }
 0x204   : > { %v2317_v20 = vpop.f32.mrf.mxu0  ;;  %v3172_v9 = vpop.f32.mrf.mxu1 }
 0x205   : > { %2665 = vst [vmem:[%s4592_s28 + $0xf0] sm:$0xff] %v2633_v38  ;;  %v2631_v1 = vmax.f32 %v2599_v12, 0.0  ;;  %v2602_v10 = vadd.f32 %v4585_v18, %v2529_v24  ;;  %v2380_v14 = vadd.f32 %v2317_v20, %v2124_v48 }
 0x206   : > { %v3160_v43 = vpop.f32.mrf.mxu0 }
 0x207   : > { %2663 = vst [vmem:[%s4592_s28 + $0xe0] sm:$0xff] %v2631_v1  ;;  %v2634_v6 = vmax.f32 %v2602_v10, 0.0  ;;  %v2600_v13 = vadd.f32 %v4585_v18, %v2380_v14 }
 0x209   : > { %2666 = vst [vmem:[%s4592_s28 + $0xf8] sm:$0xff] %v2634_v6  ;;  %v2632_v53 = vmax.f32 %v2600_v13, 0.0 }
 0x20b   : > { %2664 = vst [vmem:[%s4592_s28 + $0xe8] sm:$0xff] %v2632_v53 }
 0x20c PF: > { %s15_s20 = sadd.s32 1, %s3412_s20   ;;  %s4772_s18 = smov %s3408_s19 }
 0x20d   : > { %p12_p5 = scmp.ge.s32.totalorder %s15_s20, 4   ;;  %s4773_s19 = smov %s4775_s21 }
 0x20f   :  { %14 = sbr.rel (!%p12_p5) target bundleno = 2 (0x2), region = 80 }

</bundles_post_ra>
